<compile_context>
chip_gen: v6e
topology: v6e:2x2x1
jax: 0.10.0
libtpu: 0.0.40
codegen_flags: <defaults>
</compile_context>

<pallas_src>
import math
import functools

import jax
import jax.numpy as jnp
from jax.experimental import pallas as pl
from jax.experimental.pallas import tpu as pltpu

# Constants from the reference file: d = 3, Volumn = volume of the unit 3-ball.
D_CONST = 3
VOLUMN = math.pi ** (D_CONST / 2) / math.gamma(D_CONST / 2 + 1)  # == 4/3 * pi


def _round_up(a, b):
    return (a + b - 1) // b * b


def _pad_to(arr, shape):
    pads = [(0, t - s) for s, t in zip(arr.shape, shape)]
    if all(p == (0, 0) for p in pads):
        return arr
    return jnp.pad(arr, pads)


def _swish2(x):
    # Swish2(x) = x^2 * sigmoid(x); sigmoid via a single EUP tanh push:
    # sigmoid(x) = 0.5 * (tanh(0.5*x) + 1).  Exact (no approx reciprocal).
    return (x * x) * (0.5 * (jnp.tanh(0.5 * x) + 1.0))


def _resnet_swish4_kernel(mode,
                          xT_ref,
                          w1c_ref, b1_ref, w2_ref, b2_ref,
                          w3_ref, b3_ref, w4_ref, b4_ref,
                          wout_ref, o_ref):
    """One batch tile of the ResNet_Swish4 forward (batch along lanes)."""
    f32 = jnp.float32
    xT = xT_ref[...]                                   # [dim_p, TN] f32
    mm_dtype = w2_ref.dtype                            # f32 or bf16

    # Fused [Ix^T ; W1] @ x^T  -> rows [0:m_p) = skip path s, rows [m_p:2m_p)
    # = fc1 pre-activation.  Kept in f32 (tiny K = dim) so s == x exactly.
    h = jnp.dot(w1c_ref[...], xT, preferred_element_type=f32)   # [2*m_p, TN]
    m_p = h.shape[0] // 2
    s = h[:m_p, :]

    # Block 1
    y = _swish2(h[m_p:, :] + b1_ref[...])
    y = _swish2(jnp.dot(w2_ref[...], y.astype(mm_dtype),
                        preferred_element_type=f32) + b2_ref[...])
    y = y + s
    s = y

    # Block 2
    y = _swish2(jnp.dot(w3_ref[...], y.astype(mm_dtype),
                        preferred_element_type=f32) + b3_ref[...])
    y = _swish2(jnp.dot(w4_ref[...], y.astype(mm_dtype),
                        preferred_element_type=f32) + b4_ref[...])
    y = y + s

    # Output layer (Linear(m, 1, bias=False)): VPU multiply against the weight
    # column + sublane (XLU) reduction -> lane-dense [TN] row, no relayout.
    y_out = jnp.sum(y * wout_ref[...], axis=0)         # [TN]

    if mode == "none":
        out = y_out
    else:
        r = jnp.sum(xT * xT, axis=0)                   # [TN]; padded rows are 0
        c = jnp.cos(math.pi / 4 + (math.pi / 4) * r)
        if mode == "net_u":
            out = c * jnp.exp(y_out) + 1.0 / (D_CONST * (D_CONST - 2) * VOLUMN)
        else:  # "net_v"
            out = c * y_out

    # Lane-dense store: batch runs along the lane axis of the (1, 1, TN) block.
    o_ref[...] = out[None, None, :]


def resnet_swish4_forward(x, params, boundary_control_type="none",
                          tile_n=512, matmul_dtype=jnp.float32):
    """Pallas forward.  x: [N, dim] float32.  Returns [N] float32.

    NOTE: the PyTorch constructor default is boundary_control_type='cube',
    for which forward() has no matching branch and returns None; only 'none',
    'net_u' and 'net_v' are implemented here.
    """
    if boundary_control_type not in ("none", "net_u", "net_v"):
        # TODO(synk): 'cube' (the PyTorch constructor default) returns None in
        # the reference forward; there is nothing meaningful to compute.
        raise ValueError(f"unsupported boundary_control_type: "
                         f"{boundary_control_type}")

    N, dim = x.shape
    m = params["fc1_w"].shape[0]
    f32 = jnp.float32
    wdt = jnp.dtype(matmul_dtype)

    # Padded problem sizes (zero padding is numerically inert: padded weight
    # rows/cols and padded bias entries are 0 and Swish2(0) = 0).
    dim_p = _round_up(max(dim, 1), 8)        # sublane-aligned feature dim
    m_p = _round_up(m, 8)                    # sublane-aligned hidden width
    tile_n = max(128, _round_up(int(tile_n), 128))       # batch on lanes
    if N > 128:
        # Keep >= 2 grid steps so the 'parallel' batch axis can split across
        # both TensorCores on v7x.
        tile_n = min(tile_n, _round_up(pl.cdiv(N, 2), 128))
    tile_n = min(tile_n, _round_up(N, 128))
    n_p = _round_up(N, tile_n)
    grid_n = n_p // tile_n

    # Transposed inputs / native-layout weights.
    xT = _pad_to(jnp.transpose(x.astype(f32)), (dim_p, n_p))        # [dim_p, n_p]
    ixT = _pad_to(params["Ix"].astype(f32).T, (m_p, dim_p))         # [m_p, dim_p]
    w1 = _pad_to(params["fc1_w"].astype(f32), (m_p, dim_p))
    w1c = jnp.concatenate([ixT, w1], axis=0)                        # [2*m_p, dim_p] f32
    w2 = _pad_to(params["fc2_w"].astype(f32), (m_p, m_p)).astype(wdt)
    w3 = _pad_to(params["fc3_w"].astype(f32), (m_p, m_p)).astype(wdt)
    w4 = _pad_to(params["fc4_w"].astype(f32), (m_p, m_p)).astype(wdt)
    b1 = _pad_to(params["fc1_b"].astype(f32).reshape(m, 1), (m_p, 1))
    b2 = _pad_to(params["fc2_b"].astype(f32).reshape(m, 1), (m_p, 1))
    b3 = _pad_to(params["fc3_b"].astype(f32).reshape(m, 1), (m_p, 1))
    b4 = _pad_to(params["fc4_b"].astype(f32).reshape(m, 1), (m_p, 1))
    wout = _pad_to(params["out_w"].astype(f32).reshape(m, 1), (m_p, 1))

    # VMEM budget / cost estimate.
    wbytes = 4 * (2 * m_p * dim_p) + w2.dtype.itemsize * 3 * m_p * m_p + 4 * 5 * m_p
    act_bytes = 4 * tile_n * (6 * m_p + 2 * dim_p)
    est = 2 * wbytes + act_bytes + 2 * 4 * tile_n * (dim_p + 1) + (4 << 20)
    try:
        cap = int(pltpu.get_tpu_info().vmem_capacity_bytes)
    except Exception:
        cap = 64 << 20                       # v7x per-TC physical VMEM
    vmem_limit = int(min(cap * 3 // 4, max(est, 32 << 20)))

    flops = 2 * n_p * (2 * m_p * dim_p + 3 * m_p * m_p + m_p)
    transc = n_p * (4 * m_p + 2)
    bytes_acc = wbytes + 4 * n_p * (dim_p + 1)

    full = lambda i: (0, 0)

    def build(single_buffer_weights):
        def ws(shape):
            # Constant index_map -> the block is fetched once; single-buffer it
            # to halve resident weight VMEM (matters for large m on v7x).
            if single_buffer_weights:
                return pl.BlockSpec(shape, full, pipeline_mode=pl.Buffered(1))
            return pl.BlockSpec(shape, full)

        return pl.pallas_call(
            functools.partial(_resnet_swish4_kernel, boundary_control_type),
            out_shape=jax.ShapeDtypeStruct((grid_n, 1, tile_n), f32),
            grid=(grid_n,),
            in_specs=[
                pl.BlockSpec((dim_p, tile_n), lambda i: (0, i)),   # x^T batch tile
                ws((2 * m_p, dim_p)),                              # [Ix^T ; W1]
                ws((m_p, 1)),                                      # b1 (column)
                ws((m_p, m_p)),                                    # W2
                ws((m_p, 1)),                                      # b2
                ws((m_p, m_p)),                                    # W3
                ws((m_p, 1)),                                      # b3
                ws((m_p, m_p)),                                    # W4
                ws((m_p, 1)),                                      # b4
                ws((m_p, 1)),                                      # out_w (column)
            ],
            out_specs=pl.BlockSpec((1, 1, tile_n), lambda i: (i, 0, 0)),
            compiler_params=pltpu.CompilerParams(
                dimension_semantics=("parallel",),
                vmem_limit_bytes=vmem_limit,
            ),
            cost_estimate=pl.CostEstimate(
                flops=int(flops),
                transcendentals=int(transc),
                bytes_accessed=int(bytes_acc),
            ),
        )

    args = (xT, w1c, b1, w2, b2, w3, b3, w4, b4, wout)
    try:
        out3d = build(True)(*args)
        out3d = jax.block_until_ready(out3d)
    except Exception:
        # pipeline_mode=pl.Buffered(1) not supported by this JAX build; the
        # constant index_map already avoids re-DMA, so just accept default
        # double-buffered weight allocation.
        out3d = build(False)(*args)

    # (grid_n, 1, tile_n) -> [n_p] -> drop batch padding == y.squeeze(1)
    return out3d.reshape(n_p)[:N]


def init_params(key, m, dim):
    """Deterministic init matching PyTorch nn.Linear default shapes."""
    ks = jax.random.split(key, 9)

    def linear(kw, kb, fan_in, fan_out):
        bound = 1.0 / math.sqrt(fan_in)
        w = jax.random.uniform(kw, (fan_out, fan_in), jnp.float32, -bound, bound)
        b = jax.random.uniform(kb, (fan_out,), jnp.float32, -bound, bound)
        return w, b

    fc1_w, fc1_b = linear(ks[0], ks[1], dim, m)
    fc2_w, fc2_b = linear(ks[2], ks[3], m, m)
    fc3_w, fc3_b = linear(ks[4], ks[5], m, m)
    fc4_w, fc4_b = linear(ks[6], ks[7], m, m)
    bound = 1.0 / math.sqrt(m)
    out_w = jax.random.uniform(ks[8], (1, m), jnp.float32, -bound, bound)

    ix = jnp.zeros((dim, m), jnp.float32).at[jnp.arange(dim), jnp.arange(dim)].set(1.0)

    return dict(fc1_w=fc1_w, fc1_b=fc1_b, fc2_w=fc2_w, fc2_b=fc2_b,
                fc3_w=fc3_w, fc3_b=fc3_b, fc4_w=fc4_w, fc4_b=fc4_b,
                out_w=out_w, Ix=ix)


def reference_forward(x, params, boundary_control_type="none"):
    """Pure-JAX reference (mirrors the PyTorch forward exactly)."""
    def swish2(v):
        return v * v * jax.nn.sigmoid(v)

    s = x @ params["Ix"]
    y = swish2(x @ params["fc1_w"].T + params["fc1_b"])
    y = swish2(y @ params["fc2_w"].T + params["fc2_b"])
    y = y + s
    s = y
    y = swish2(y @ params["fc3_w"].T + params["fc3_b"])
    y = swish2(y @ params["fc4_w"].T + params["fc4_b"])
    y = y + s
    y = y @ params["out_w"].T                    # [N, 1]
    if boundary_control_type == "none":
        return y[:, 0]
    r = jnp.sum(x ** 2, axis=1)
    c = jnp.cos(math.pi / 4 + math.pi / 4 * r)
    if boundary_control_type == "net_u":
        return c * jnp.exp(y)[:, 0] + 1.0 / (D_CONST * (D_CONST - 2) * VOLUMN)
    elif boundary_control_type == "net_v":
        return c * y[:, 0]
    return None  # 'cube' has no branch in the original forward


if __name__ == "__main__":
    key = jax.random.PRNGKey(0)
    kx, kp, kx2 = jax.random.split(key, 3)

    N, dim, m = 64, 2, 32
    x = jax.random.normal(kx, (N, dim), jnp.float32)
    params = init_params(kp, m, dim)

    # f32 matmuls: all three supported boundary-control modes.
    for mode in ("none", "net_u", "net_v"):
        out = jax.block_until_ready(
            resnet_swish4_forward(x, params, boundary_control_type=mode))
        ref = reference_forward(x, params, boundary_control_type=mode)
        assert out.shape == (N,)
        err = float(jnp.max(jnp.abs(out - ref)))
        assert jnp.allclose(out, ref, atol=1e-3, rtol=1e-3), (mode, err)

    # Ragged batch exercising the pad/slice wrapper and a 2-step grid.
    N2 = 200
    x2 = jax.random.normal(kx2, (N2, dim), jnp.float32)
    out2 = jax.block_until_ready(
        resnet_swish4_forward(x2, params, boundary_control_type="none",
                              tile_n=128))
    ref2 = reference_forward(x2, params, boundary_control_type="none")
    assert out2.shape == (N2,)
    err2 = float(jnp.max(jnp.abs(out2 - ref2)))
    assert jnp.allclose(out2, ref2, atol=1e-3, rtol=1e-3), err2

    # bf16 MXU operands (v6e/v7x fast path), f32 accumulation -> looser tol.
    out3 = jax.block_until_ready(
        resnet_swish4_forward(x, params, boundary_control_type="none",
                              matmul_dtype=jnp.bfloat16))
    ref3 = reference_forward(x, params, boundary_control_type="none")
    err3 = float(jnp.max(jnp.abs(out3 - ref3)))
    assert jnp.allclose(out3, ref3, atol=7e-2, rtol=7e-2), err3

    print("KERNEL_OK")
</pallas_src>

<mosaic_0001>
module attributes {stable_mosaic.version = 11 : i64} {
  func.func @_resnet_swish4_kernel(%arg0: i32, %arg1: memref<8x128xf32, #tpu.memory_space<vmem>>, %arg2: memref<64x8xf32, #tpu.memory_space<vmem>>, %arg3: memref<32x1xf32, #tpu.memory_space<vmem>>, %arg4: memref<32x32xf32, #tpu.memory_space<vmem>>, %arg5: memref<32x1xf32, #tpu.memory_space<vmem>>, %arg6: memref<32x32xf32, #tpu.memory_space<vmem>>, %arg7: memref<32x1xf32, #tpu.memory_space<vmem>>, %arg8: memref<32x32xf32, #tpu.memory_space<vmem>>, %arg9: memref<32x1xf32, #tpu.memory_space<vmem>>, %arg10: memref<32x1xf32, #tpu.memory_space<vmem>>, %arg11: memref<1x1x128xf32, #tpu.memory_space<vmem>>) attributes {dimension_semantics = [#tpu.dimension_semantics<parallel>], iteration_bounds = array<i64: 1>, scalar_prefetch = 0 : i64, scratch_operands = 0 : i64, tpu.core_type = #tpu.core_type<tc>, window_params = [{transform_indices = @transform_0, window_bounds = array<i64: 8, 128>}, {pipeline_mode = #tpu.pipeline_mode<synchronous>, transform_indices = @transform_1, window_bounds = array<i64: 64, 8>}, {pipeline_mode = #tpu.pipeline_mode<synchronous>, transform_indices = @transform_2, window_bounds = array<i64: 32, 1>}, {pipeline_mode = #tpu.pipeline_mode<synchronous>, transform_indices = @transform_3, window_bounds = array<i64: 32, 32>}, {pipeline_mode = #tpu.pipeline_mode<synchronous>, transform_indices = @transform_4, window_bounds = array<i64: 32, 1>}, {pipeline_mode = #tpu.pipeline_mode<synchronous>, transform_indices = @transform_5, window_bounds = array<i64: 32, 32>}, {pipeline_mode = #tpu.pipeline_mode<synchronous>, transform_indices = @transform_6, window_bounds = array<i64: 32, 1>}, {pipeline_mode = #tpu.pipeline_mode<synchronous>, transform_indices = @transform_7, window_bounds = array<i64: 32, 32>}, {pipeline_mode = #tpu.pipeline_mode<synchronous>, transform_indices = @transform_8, window_bounds = array<i64: 32, 1>}, {pipeline_mode = #tpu.pipeline_mode<synchronous>, transform_indices = @transform_9, window_bounds = array<i64: 32, 1>}, {transform_indices = @transform_10, window_bounds = array<i64: 1, 1, 128>}]} {
    %c0 = arith.constant 0 : index
    %c0_0 = arith.constant 0 : index
    %0 = vector.load %arg1[%c0, %c0_0] : memref<8x128xf32, #tpu.memory_space<vmem>>, vector<8x128xf32>
    %c0_1 = arith.constant 0 : index
    %c0_2 = arith.constant 0 : index
    %1 = vector.load %arg2[%c0_1, %c0_2] : memref<64x8xf32, #tpu.memory_space<vmem>>, vector<64x8xf32>
    %cst = arith.constant dense<0.000000e+00> : vector<64x128xf32>
    %2 = tpu.matmul %1, %0, %cst {dimension_numbers = #tpu.dot_dimension_numbers<[1], [0], [0], [1], [0, 0, 1, 1], [], []>} : vector<64x8xf32>, vector<8x128xf32>, vector<64x128xf32> -> vector<64x128xf32>
    %3 = vector.extract_strided_slice %2 {offsets = [0, 0], sizes = [32, 128], strides = [1, 1]} : vector<64x128xf32> to vector<32x128xf32>
    %4 = vector.extract_strided_slice %2 {offsets = [32, 0], sizes = [32, 128], strides = [1, 1]} : vector<64x128xf32> to vector<32x128xf32>
    %c0_3 = arith.constant 0 : index
    %c0_4 = arith.constant 0 : index
    %5 = vector.load %arg3[%c0_3, %c0_4] : memref<32x1xf32, #tpu.memory_space<vmem>>, vector<32x1xf32>
    %6 = vector.broadcast %5 : vector<32x1xf32> to vector<32x128xf32>
    %7 = arith.addf %4, %6 : vector<32x128xf32>
    %8 = arith.mulf %7, %7 : vector<32x128xf32>
    %cst_5 = arith.constant 5.000000e-01 : f32
    %9 = vector.broadcast %cst_5 : f32 to vector<32x128xf32>
    %10 = arith.mulf %9, %7 : vector<32x128xf32>
    %11 = math.tanh %10 : vector<32x128xf32>
    %cst_6 = arith.constant 1.000000e+00 : f32
    %12 = vector.broadcast %cst_6 : f32 to vector<32x128xf32>
    %13 = arith.addf %11, %12 : vector<32x128xf32>
    %cst_7 = arith.constant 5.000000e-01 : f32
    %14 = vector.broadcast %cst_7 : f32 to vector<32x128xf32>
    %15 = arith.mulf %14, %13 : vector<32x128xf32>
    %16 = arith.mulf %8, %15 : vector<32x128xf32>
    %c0_8 = arith.constant 0 : index
    %c0_9 = arith.constant 0 : index
    %17 = vector.load %arg4[%c0_8, %c0_9] : memref<32x32xf32, #tpu.memory_space<vmem>>, vector<32x32xf32>
    %cst_10 = arith.constant dense<0.000000e+00> : vector<32x128xf32>
    %18 = tpu.matmul %17, %16, %cst_10 {dimension_numbers = #tpu.dot_dimension_numbers<[1], [0], [0], [1], [0, 0, 1, 1], [], []>} : vector<32x32xf32>, vector<32x128xf32>, vector<32x128xf32> -> vector<32x128xf32>
    %c0_11 = arith.constant 0 : index
    %c0_12 = arith.constant 0 : index
    %19 = vector.load %arg5[%c0_11, %c0_12] : memref<32x1xf32, #tpu.memory_space<vmem>>, vector<32x1xf32>
    %20 = vector.broadcast %19 : vector<32x1xf32> to vector<32x128xf32>
    %21 = arith.addf %18, %20 : vector<32x128xf32>
    %22 = arith.mulf %21, %21 : vector<32x128xf32>
    %cst_13 = arith.constant 5.000000e-01 : f32
    %23 = vector.broadcast %cst_13 : f32 to vector<32x128xf32>
    %24 = arith.mulf %23, %21 : vector<32x128xf32>
    %25 = math.tanh %24 : vector<32x128xf32>
    %cst_14 = arith.constant 1.000000e+00 : f32
    %26 = vector.broadcast %cst_14 : f32 to vector<32x128xf32>
    %27 = arith.addf %25, %26 : vector<32x128xf32>
    %cst_15 = arith.constant 5.000000e-01 : f32
    %28 = vector.broadcast %cst_15 : f32 to vector<32x128xf32>
    %29 = arith.mulf %28, %27 : vector<32x128xf32>
    %30 = arith.mulf %22, %29 : vector<32x128xf32>
    %31 = arith.addf %30, %3 : vector<32x128xf32>
    %c0_16 = arith.constant 0 : index
    %c0_17 = arith.constant 0 : index
    %32 = vector.load %arg6[%c0_16, %c0_17] : memref<32x32xf32, #tpu.memory_space<vmem>>, vector<32x32xf32>
    %cst_18 = arith.constant dense<0.000000e+00> : vector<32x128xf32>
    %33 = tpu.matmul %32, %31, %cst_18 {dimension_numbers = #tpu.dot_dimension_numbers<[1], [0], [0], [1], [0, 0, 1, 1], [], []>} : vector<32x32xf32>, vector<32x128xf32>, vector<32x128xf32> -> vector<32x128xf32>
    %c0_19 = arith.constant 0 : index
    %c0_20 = arith.constant 0 : index
    %34 = vector.load %arg7[%c0_19, %c0_20] : memref<32x1xf32, #tpu.memory_space<vmem>>, vector<32x1xf32>
    %35 = vector.broadcast %34 : vector<32x1xf32> to vector<32x128xf32>
    %36 = arith.addf %33, %35 : vector<32x128xf32>
    %37 = arith.mulf %36, %36 : vector<32x128xf32>
    %cst_21 = arith.constant 5.000000e-01 : f32
    %38 = vector.broadcast %cst_21 : f32 to vector<32x128xf32>
    %39 = arith.mulf %38, %36 : vector<32x128xf32>
    %40 = math.tanh %39 : vector<32x128xf32>
    %cst_22 = arith.constant 1.000000e+00 : f32
    %41 = vector.broadcast %cst_22 : f32 to vector<32x128xf32>
    %42 = arith.addf %40, %41 : vector<32x128xf32>
    %cst_23 = arith.constant 5.000000e-01 : f32
    %43 = vector.broadcast %cst_23 : f32 to vector<32x128xf32>
    %44 = arith.mulf %43, %42 : vector<32x128xf32>
    %45 = arith.mulf %37, %44 : vector<32x128xf32>
    %c0_24 = arith.constant 0 : index
    %c0_25 = arith.constant 0 : index
    %46 = vector.load %arg8[%c0_24, %c0_25] : memref<32x32xf32, #tpu.memory_space<vmem>>, vector<32x32xf32>
    %cst_26 = arith.constant dense<0.000000e+00> : vector<32x128xf32>
    %47 = tpu.matmul %46, %45, %cst_26 {dimension_numbers = #tpu.dot_dimension_numbers<[1], [0], [0], [1], [0, 0, 1, 1], [], []>} : vector<32x32xf32>, vector<32x128xf32>, vector<32x128xf32> -> vector<32x128xf32>
    %c0_27 = arith.constant 0 : index
    %c0_28 = arith.constant 0 : index
    %48 = vector.load %arg9[%c0_27, %c0_28] : memref<32x1xf32, #tpu.memory_space<vmem>>, vector<32x1xf32>
    %49 = vector.broadcast %48 : vector<32x1xf32> to vector<32x128xf32>
    %50 = arith.addf %47, %49 : vector<32x128xf32>
    %51 = arith.mulf %50, %50 : vector<32x128xf32>
    %cst_29 = arith.constant 5.000000e-01 : f32
    %52 = vector.broadcast %cst_29 : f32 to vector<32x128xf32>
    %53 = arith.mulf %52, %50 : vector<32x128xf32>
    %54 = math.tanh %53 : vector<32x128xf32>
    %cst_30 = arith.constant 1.000000e+00 : f32
    %55 = vector.broadcast %cst_30 : f32 to vector<32x128xf32>
    %56 = arith.addf %54, %55 : vector<32x128xf32>
    %cst_31 = arith.constant 5.000000e-01 : f32
    %57 = vector.broadcast %cst_31 : f32 to vector<32x128xf32>
    %58 = arith.mulf %57, %56 : vector<32x128xf32>
    %59 = arith.mulf %51, %58 : vector<32x128xf32>
    %60 = arith.addf %59, %31 : vector<32x128xf32>
    %c0_32 = arith.constant 0 : index
    %c0_33 = arith.constant 0 : index
    %61 = vector.load %arg10[%c0_32, %c0_33] : memref<32x1xf32, #tpu.memory_space<vmem>>, vector<32x1xf32>
    %62 = vector.broadcast %61 : vector<32x1xf32> to vector<32x128xf32>
    %63 = arith.mulf %60, %62 : vector<32x128xf32>
    %cst_34 = arith.constant dense<0.000000e+00> : vector<128xf32>
    %64 = vector.multi_reduction <add>, %63, %cst_34 [0] : vector<32x128xf32> to vector<128xf32>
    %65 = vector.shape_cast %64 : vector<128xf32> to vector<1x1x128xf32>
    %c0_35 = arith.constant 0 : index
    %c0_36 = arith.constant 0 : index
    %c0_37 = arith.constant 0 : index
    %66 = vector.load %arg11[%c0_35, %c0_36, %c0_37] : memref<1x1x128xf32, #tpu.memory_space<vmem>>, vector<1x1x128xf32>
    tpu.vector_store %arg11[%c0_35, %c0_36, %c0_37], %65 {strides = array<i32>} : memref<1x1x128xf32, #tpu.memory_space<vmem>>, vector<1x1x128xf32>,
    return
  }
  func.func @transform_0(%arg0: i32) -> (i32, i32) {
    %c0_i32 = arith.constant 0 : i32
    %c0_i32_0 = arith.constant 0 : i32
    return %c0_i32, %arg0 : i32, i32
  }
  func.func @transform_1(%arg0: i32) -> (i32, i32) {
    %c0_i32 = arith.constant 0 : i32
    %c0_i32_0 = arith.constant 0 : i32
    %c0_i32_1 = arith.constant 0 : i32
    return %c0_i32, %c0_i32_0 : i32, i32
  }
  func.func @transform_2(%arg0: i32) -> (i32, i32) {
    %c0_i32 = arith.constant 0 : i32
    %c0_i32_0 = arith.constant 0 : i32
    %c0_i32_1 = arith.constant 0 : i32
    return %c0_i32, %c0_i32_0 : i32, i32
  }
  func.func @transform_3(%arg0: i32) -> (i32, i32) {
    %c0_i32 = arith.constant 0 : i32
    %c0_i32_0 = arith.constant 0 : i32
    %c0_i32_1 = arith.constant 0 : i32
    return %c0_i32, %c0_i32_0 : i32, i32
  }
  func.func @transform_4(%arg0: i32) -> (i32, i32) {
    %c0_i32 = arith.constant 0 : i32
    %c0_i32_0 = arith.constant 0 : i32
    %c0_i32_1 = arith.constant 0 : i32
    return %c0_i32, %c0_i32_0 : i32, i32
  }
  func.func @transform_5(%arg0: i32) -> (i32, i32) {
    %c0_i32 = arith.constant 0 : i32
    %c0_i32_0 = arith.constant 0 : i32
    %c0_i32_1 = arith.constant 0 : i32
    return %c0_i32, %c0_i32_0 : i32, i32
  }
  func.func @transform_6(%arg0: i32) -> (i32, i32) {
    %c0_i32 = arith.constant 0 : i32
    %c0_i32_0 = arith.constant 0 : i32
    %c0_i32_1 = arith.constant 0 : i32
    return %c0_i32, %c0_i32_0 : i32, i32
  }
  func.func @transform_7(%arg0: i32) -> (i32, i32) {
    %c0_i32 = arith.constant 0 : i32
    %c0_i32_0 = arith.constant 0 : i32
    %c0_i32_1 = arith.constant 0 : i32
    return %c0_i32, %c0_i32_0 : i32, i32
  }
  func.func @transform_8(%arg0: i32) -> (i32, i32) {
    %c0_i32 = arith.constant 0 : i32
    %c0_i32_0 = arith.constant 0 : i32
    %c0_i32_1 = arith.constant 0 : i32
    return %c0_i32, %c0_i32_0 : i32, i32
  }
  func.func @transform_9(%arg0: i32) -> (i32, i32) {
    %c0_i32 = arith.constant 0 : i32
    %c0_i32_0 = arith.constant 0 : i32
    %c0_i32_1 = arith.constant 0 : i32
    return %c0_i32, %c0_i32_0 : i32, i32
  }
  func.func @transform_10(%arg0: i32) -> (i32, i32, i32) {
    %c0_i32 = arith.constant 0 : i32
    %c0_i32_0 = arith.constant 0 : i32
    %c0_i32_1 = arith.constant 0 : i32
    return %arg0, %c0_i32, %c0_i32_0 : i32, i32, i32
  }
}

module attributes {stable_mosaic.version = 11 : i64} {
  func.func @_resnet_swish4_kernel(%arg0: i32, %arg1: memref<8x128xf32, #tpu.memory_space<vmem>>, %arg2: memref<64x8xf32, #tpu.memory_space<vmem>>, %arg3: memref<32x1xf32, #tpu.memory_space<vmem>>, %arg4: memref<32x32xf32, #tpu.memory_space<vmem>>, %arg5: memref<32x1xf32, #tpu.memory_space<vmem>>, %arg6: memref<32x32xf32, #tpu.memory_space<vmem>>, %arg7: memref<32x1xf32, #tpu.memory_space<vmem>>, %arg8: memref<32x32xf32, #tpu.memory_space<vmem>>, %arg9: memref<32x1xf32, #tpu.memory_space<vmem>>, %arg10: memref<32x1xf32, #tpu.memory_space<vmem>>, %arg11: memref<1x1x128xf32, #tpu.memory_space<vmem>>) attributes {dimension_semantics = [#tpu.dimension_semantics<parallel>], iteration_bounds = array<i64: 1>, scalar_prefetch = 0 : i64, scratch_operands = 0 : i64, tpu.core_type = #tpu.core_type<tc>, window_params = [{transform_indices = @transform_0, window_bounds = array<i64: 8, 128>}, {pipeline_mode = #tpu.pipeline_mode<synchronous>, transform_indices = @transform_1, window_bounds = array<i64: 64, 8>}, {pipeline_mode = #tpu.pipeline_mode<synchronous>, transform_indices = @transform_2, window_bounds = array<i64: 32, 1>}, {pipeline_mode = #tpu.pipeline_mode<synchronous>, transform_indices = @transform_3, window_bounds = array<i64: 32, 32>}, {pipeline_mode = #tpu.pipeline_mode<synchronous>, transform_indices = @transform_4, window_bounds = array<i64: 32, 1>}, {pipeline_mode = #tpu.pipeline_mode<synchronous>, transform_indices = @transform_5, window_bounds = array<i64: 32, 32>}, {pipeline_mode = #tpu.pipeline_mode<synchronous>, transform_indices = @transform_6, window_bounds = array<i64: 32, 1>}, {pipeline_mode = #tpu.pipeline_mode<synchronous>, transform_indices = @transform_7, window_bounds = array<i64: 32, 32>}, {pipeline_mode = #tpu.pipeline_mode<synchronous>, transform_indices = @transform_8, window_bounds = array<i64: 32, 1>}, {pipeline_mode = #tpu.pipeline_mode<synchronous>, transform_indices = @transform_9, window_bounds = array<i64: 32, 1>}, {transform_indices = @transform_10, window_bounds = array<i64: 1, 1, 128>}]} {
    %c0 = arith.constant 0 : index
    %c0_0 = arith.constant 0 : index
    %0 = vector.load %arg1[%c0, %c0_0] : memref<8x128xf32, #tpu.memory_space<vmem>>, vector<8x128xf32>
    %c0_1 = arith.constant 0 : index
    %c0_2 = arith.constant 0 : index
    %1 = vector.load %arg2[%c0_1, %c0_2] : memref<64x8xf32, #tpu.memory_space<vmem>>, vector<64x8xf32>
    %cst = arith.constant dense<0.000000e+00> : vector<64x128xf32>
    %2 = tpu.matmul %1, %0, %cst {dimension_numbers = #tpu.dot_dimension_numbers<[1], [0], [0], [1], [0, 0, 1, 1], [], []>} : vector<64x8xf32>, vector<8x128xf32>, vector<64x128xf32> -> vector<64x128xf32>
    %3 = vector.extract_strided_slice %2 {offsets = [0, 0], sizes = [32, 128], strides = [1, 1]} : vector<64x128xf32> to vector<32x128xf32>
    %4 = vector.extract_strided_slice %2 {offsets = [32, 0], sizes = [32, 128], strides = [1, 1]} : vector<64x128xf32> to vector<32x128xf32>
    %c0_3 = arith.constant 0 : index
    %c0_4 = arith.constant 0 : index
    %5 = vector.load %arg3[%c0_3, %c0_4] : memref<32x1xf32, #tpu.memory_space<vmem>>, vector<32x1xf32>
    %6 = vector.broadcast %5 : vector<32x1xf32> to vector<32x128xf32>
    %7 = arith.addf %4, %6 : vector<32x128xf32>
    %8 = arith.mulf %7, %7 : vector<32x128xf32>
    %cst_5 = arith.constant 5.000000e-01 : f32
    %9 = vector.broadcast %cst_5 : f32 to vector<32x128xf32>
    %10 = arith.mulf %9, %7 : vector<32x128xf32>
    %11 = math.tanh %10 : vector<32x128xf32>
    %cst_6 = arith.constant 1.000000e+00 : f32
    %12 = vector.broadcast %cst_6 : f32 to vector<32x128xf32>
    %13 = arith.addf %11, %12 : vector<32x128xf32>
    %cst_7 = arith.constant 5.000000e-01 : f32
    %14 = vector.broadcast %cst_7 : f32 to vector<32x128xf32>
    %15 = arith.mulf %14, %13 : vector<32x128xf32>
    %16 = arith.mulf %8, %15 : vector<32x128xf32>
    %c0_8 = arith.constant 0 : index
    %c0_9 = arith.constant 0 : index
    %17 = vector.load %arg4[%c0_8, %c0_9] : memref<32x32xf32, #tpu.memory_space<vmem>>, vector<32x32xf32>
    %cst_10 = arith.constant dense<0.000000e+00> : vector<32x128xf32>
    %18 = tpu.matmul %17, %16, %cst_10 {dimension_numbers = #tpu.dot_dimension_numbers<[1], [0], [0], [1], [0, 0, 1, 1], [], []>} : vector<32x32xf32>, vector<32x128xf32>, vector<32x128xf32> -> vector<32x128xf32>
    %c0_11 = arith.constant 0 : index
    %c0_12 = arith.constant 0 : index
    %19 = vector.load %arg5[%c0_11, %c0_12] : memref<32x1xf32, #tpu.memory_space<vmem>>, vector<32x1xf32>
    %20 = vector.broadcast %19 : vector<32x1xf32> to vector<32x128xf32>
    %21 = arith.addf %18, %20 : vector<32x128xf32>
    %22 = arith.mulf %21, %21 : vector<32x128xf32>
    %cst_13 = arith.constant 5.000000e-01 : f32
    %23 = vector.broadcast %cst_13 : f32 to vector<32x128xf32>
    %24 = arith.mulf %23, %21 : vector<32x128xf32>
    %25 = math.tanh %24 : vector<32x128xf32>
    %cst_14 = arith.constant 1.000000e+00 : f32
    %26 = vector.broadcast %cst_14 : f32 to vector<32x128xf32>
    %27 = arith.addf %25, %26 : vector<32x128xf32>
    %cst_15 = arith.constant 5.000000e-01 : f32
    %28 = vector.broadcast %cst_15 : f32 to vector<32x128xf32>
    %29 = arith.mulf %28, %27 : vector<32x128xf32>
    %30 = arith.mulf %22, %29 : vector<32x128xf32>
    %31 = arith.addf %30, %3 : vector<32x128xf32>
    %c0_16 = arith.constant 0 : index
    %c0_17 = arith.constant 0 : index
    %32 = vector.load %arg6[%c0_16, %c0_17] : memref<32x32xf32, #tpu.memory_space<vmem>>, vector<32x32xf32>
    %cst_18 = arith.constant dense<0.000000e+00> : vector<32x128xf32>
    %33 = tpu.matmul %32, %31, %cst_18 {dimension_numbers = #tpu.dot_dimension_numbers<[1], [0], [0], [1], [0, 0, 1, 1], [], []>} : vector<32x32xf32>, vector<32x128xf32>, vector<32x128xf32> -> vector<32x128xf32>
    %c0_19 = arith.constant 0 : index
    %c0_20 = arith.constant 0 : index
    %34 = vector.load %arg7[%c0_19, %c0_20] : memref<32x1xf32, #tpu.memory_space<vmem>>, vector<32x1xf32>
    %35 = vector.broadcast %34 : vector<32x1xf32> to vector<32x128xf32>
    %36 = arith.addf %33, %35 : vector<32x128xf32>
    %37 = arith.mulf %36, %36 : vector<32x128xf32>
    %cst_21 = arith.constant 5.000000e-01 : f32
    %38 = vector.broadcast %cst_21 : f32 to vector<32x128xf32>
    %39 = arith.mulf %38, %36 : vector<32x128xf32>
    %40 = math.tanh %39 : vector<32x128xf32>
    %cst_22 = arith.constant 1.000000e+00 : f32
    %41 = vector.broadcast %cst_22 : f32 to vector<32x128xf32>
    %42 = arith.addf %40, %41 : vector<32x128xf32>
    %cst_23 = arith.constant 5.000000e-01 : f32
    %43 = vector.broadcast %cst_23 : f32 to vector<32x128xf32>
    %44 = arith.mulf %43, %42 : vector<32x128xf32>
    %45 = arith.mulf %37, %44 : vector<32x128xf32>
    %c0_24 = arith.constant 0 : index
    %c0_25 = arith.constant 0 : index
    %46 = vector.load %arg8[%c0_24, %c0_25] : memref<32x32xf32, #tpu.memory_space<vmem>>, vector<32x32xf32>
    %cst_26 = arith.constant dense<0.000000e+00> : vector<32x128xf32>
    %47 = tpu.matmul %46, %45, %cst_26 {dimension_numbers = #tpu.dot_dimension_numbers<[1], [0], [0], [1], [0, 0, 1, 1], [], []>} : vector<32x32xf32>, vector<32x128xf32>, vector<32x128xf32> -> vector<32x128xf32>
    %c0_27 = arith.constant 0 : index
    %c0_28 = arith.constant 0 : index
    %48 = vector.load %arg9[%c0_27, %c0_28] : memref<32x1xf32, #tpu.memory_space<vmem>>, vector<32x1xf32>
    %49 = vector.broadcast %48 : vector<32x1xf32> to vector<32x128xf32>
    %50 = arith.addf %47, %49 : vector<32x128xf32>
    %51 = arith.mulf %50, %50 : vector<32x128xf32>
    %cst_29 = arith.constant 5.000000e-01 : f32
    %52 = vector.broadcast %cst_29 : f32 to vector<32x128xf32>
    %53 = arith.mulf %52, %50 : vector<32x128xf32>
    %54 = math.tanh %53 : vector<32x128xf32>
    %cst_30 = arith.constant 1.000000e+00 : f32
    %55 = vector.broadcast %cst_30 : f32 to vector<32x128xf32>
    %56 = arith.addf %54, %55 : vector<32x128xf32>
    %cst_31 = arith.constant 5.000000e-01 : f32
    %57 = vector.broadcast %cst_31 : f32 to vector<32x128xf32>
    %58 = arith.mulf %57, %56 : vector<32x128xf32>
    %59 = arith.mulf %51, %58 : vector<32x128xf32>
    %60 = arith.addf %59, %31 : vector<32x128xf32>
    %c0_32 = arith.constant 0 : index
    %c0_33 = arith.constant 0 : index
    %61 = vector.load %arg10[%c0_32, %c0_33] : memref<32x1xf32, #tpu.memory_space<vmem>>, vector<32x1xf32>
    %62 = vector.broadcast %61 : vector<32x1xf32> to vector<32x128xf32>
    %63 = arith.mulf %60, %62 : vector<32x128xf32>
    %cst_34 = arith.constant dense<0.000000e+00> : vector<128xf32>
    %64 = vector.multi_reduction <add>, %63, %cst_34 [0] : vector<32x128xf32> to vector<128xf32>
    %65 = vector.shape_cast %64 : vector<128xf32> to vector<1x1x128xf32>
    %c0_35 = arith.constant 0 : index
    %c0_36 = arith.constant 0 : index
    %c0_37 = arith.constant 0 : index
    %66 = vector.load %arg11[%c0_35, %c0_36, %c0_37] : memref<1x1x128xf32, #tpu.memory_space<vmem>>, vector<1x1x128xf32>
    tpu.vector_store %arg11[%c0_35, %c0_36, %c0_37], %65 {strides = array<i32>} : memref<1x1x128xf32, #tpu.memory_space<vmem>>, vector<1x1x128xf32>,
    return
  }
  func.func @transform_0(%arg0: i32) -> (i32, i32) {
    %c0_i32 = arith.constant 0 : i32
    %c0_i32_0 = arith.constant 0 : i32
    return %c0_i32, %arg0 : i32, i32
  }
  func.func @transform_1(%arg0: i32) -> (i32, i32) {
    %c0_i32 = arith.constant 0 : i32
    %c0_i32_0 = arith.constant 0 : i32
    %c0_i32_1 = arith.constant 0 : i32
    return %c0_i32, %c0_i32_0 : i32, i32
  }
  func.func @transform_2(%arg0: i32) -> (i32, i32) {
    %c0_i32 = arith.constant 0 : i32
    %c0_i32_0 = arith.constant 0 : i32
    %c0_i32_1 = arith.constant 0 : i32
    return %c0_i32, %c0_i32_0 : i32, i32
  }
  func.func @transform_3(%arg0: i32) -> (i32, i32) {
    %c0_i32 = arith.constant 0 : i32
    %c0_i32_0 = arith.constant 0 : i32
    %c0_i32_1 = arith.constant 0 : i32
    return %c0_i32, %c0_i32_0 : i32, i32
  }
  func.func @transform_4(%arg0: i32) -> (i32, i32) {
    %c0_i32 = arith.constant 0 : i32
    %c0_i32_0 = arith.constant 0 : i32
    %c0_i32_1 = arith.constant 0 : i32
    return %c0_i32, %c0_i32_0 : i32, i32
  }
  func.func @transform_5(%arg0: i32) -> (i32, i32) {
    %c0_i32 = arith.constant 0 : i32
    %c0_i32_0 = arith.constant 0 : i32
    %c0_i32_1 = arith.constant 0 : i32
    return %c0_i32, %c0_i32_0 : i32, i32
  }
  func.func @transform_6(%arg0: i32) -> (i32, i32) {
    %c0_i32 = arith.constant 0 : i32
    %c0_i32_0 = arith.constant 0 : i32
    %c0_i32_1 = arith.constant 0 : i32
    return %c0_i32, %c0_i32_0 : i32, i32
  }
  func.func @transform_7(%arg0: i32) -> (i32, i32) {
    %c0_i32 = arith.constant 0 : i32
    %c0_i32_0 = arith.constant 0 : i32
    %c0_i32_1 = arith.constant 0 : i32
    return %c0_i32, %c0_i32_0 : i32, i32
  }
  func.func @transform_8(%arg0: i32) -> (i32, i32) {
    %c0_i32 = arith.constant 0 : i32
    %c0_i32_0 = arith.constant 0 : i32
    %c0_i32_1 = arith.constant 0 : i32
    return %c0_i32, %c0_i32_0 : i32, i32
  }
  func.func @transform_9(%arg0: i32) -> (i32, i32) {
    %c0_i32 = arith.constant 0 : i32
    %c0_i32_0 = arith.constant 0 : i32
    %c0_i32_1 = arith.constant 0 : i32
    return %c0_i32, %c0_i32_0 : i32, i32
  }
  func.func @transform_10(%arg0: i32) -> (i32, i32, i32) {
    %c0_i32 = arith.constant 0 : i32
    %c0_i32_0 = arith.constant 0 : i32
    %c0_i32_1 = arith.constant 0 : i32
    return %arg0, %c0_i32, %c0_i32_0 : i32, i32, i32
  }
}

</mosaic_0001>

<bundles_post_ra>
// kernel: tpu_custom_call.1
= control target key start
LH: loop header
LB: loop body
LE: loop exit
PB: predicated region body
PF: predicated region fallthrough
CT: control target
= control target key end

     0   :  { %vm45_vm0 = vcmask 64512   ;;  %v902_v4 = vmov 0   ;;  %s1137_s0 = inlined_call_operand.vmem [shape: f32[8,128], index: 0, kind: input, shape index: {}]   ;;  %s1138_s1 = inlined_call_operand.vmem [shape: f32[64,8], index: 1, kind: input, shape index: {}]   ;;  %s1139_s2 = inlined_call_operand.vmem [shape: f32[32,1], index: 2, kind: input, shape index: {}]   ;;  %s1140_s3 = inlined_call_operand.vmem [shape: f32[32,32], index: 3, kind: input, shape index: {}]   ;;  %s1141_s4 = inlined_call_operand.vmem [shape: f32[32,1], index: 4, kind: input, shape index: {}]   ;;  %s1142_s5 = inlined_call_operand.vmem [shape: f32[32,32], index: 5, kind: input, shape index: {}]   ;;  %s1143_s6 = inlined_call_operand.vmem [shape: f32[32,1], index: 6, kind: input, shape index: {}]   ;;  %s1144_s7 = inlined_call_operand.vmem [shape: f32[32,32], index: 7, kind: input, shape index: {}]   ;;  %s1145_s8 = inlined_call_operand.vmem [shape: f32[32,1], index: 8, kind: input, shape index: {}]   ;;  %s1146_s9 = inlined_call_operand.vmem [shape: f32[32,1], index: 9, kind: input, shape index: {}]   ;;  %s1147_s10 = inlined_call_operand.hbm [shape: f32[1,1,128], index: 10, kind: output, shape index: {}]  }
   0x1   :  { %v36_v0 = vld [vmem:[%s1137_s0] sm:$0xff]  ;;  %v38_v2 = vld [vmem:[%s1138_s1 + $0x8] sm:$0xff]  ;;  %v39_v3 = vld [vmem:[%s1138_s1 + $0x10] sm:$0xff]  ;;  %846 = vset.pattern.permute.xlu0 %v902_v4  ;;  %847 = vset.pattern.permute.xlu1 %v902_v4 }
   0x2   :  { %v37_v1 = vld [vmem:[%s1138_s1] sm:$0xff]  ;;  %788 = vmatprep.subr.mxu0 %v36_v0  ;;  %v178_v5 = vld [vmem:[%s1139_s2 + $0x18] sm:$0xff]  ;;  %v176_v6 = vld [vmem:[%s1139_s2 + $0x8] sm:$0xff] }
   0x3   :  { %790 = vmatprep.mubr.msk.f32.mxu0 %vm45_vm0, %v37_v1  ;;  %789 = vmatpush3.msra.mxu0 %v36_v0  ;;  %v40_v7 = vld [vmem:[%s1138_s1 + $0x18] sm:$0xff]  ;;  %v41_v8 = vld [vmem:[%s1138_s1 + $0x20] sm:$0xff]  ;;  %v177_v9 = vld [vmem:[%s1139_s2 + $0x10] sm:$0xff] }
   0x4   :  { %791 = vmatmul.mubr.msk.f32.vlgmr.msra.gmra.mxu0 %vm45_vm0, %v38_v2  ;;  %196 = vperm.xlu0 %846, %v178_v5   ;;  %v175_v10 = vld [vmem:[%s1139_s2] sm:$0xff]  ;;  %v42_v11 = vld [vmem:[%s1138_s1 + $0x28] sm:$0xff]  ;;  %v43_v12 = vld [vmem:[%s1138_s1 + $0x30] sm:$0xff] }
   0x5   :  { %793 = vmatprep.mubr.msk.f32.mxu0 %vm45_vm0, %v39_v3  ;;  %186 = vperm.xlu1 %847, %v176_v6   ;;  %v234_v13 = vld [vmem:[%s1141_s4 + $0x18] sm:$0xff] }
   0x8   :  { %794 = vmatmul.mubr.msk.f32.gmra.mxu0 %vm45_vm0, %v40_v7  ;;  %191 = vperm.xlu0 %846, %v177_v9  }
   0x9   :  { %796 = vmatprep.mubr.msk.f32.mxu0 %vm45_vm0, %v41_v8  ;;  %181 = vperm.xlu1 %847, %v175_v10  }
   0xa   :  { %15 = vsyncpa [#allocation3], 0  ;;  %v233_v14 = vld [vmem:[%s1141_s4 + $0x10] sm:$0xff]  ;;  %v44_v15 = vld [vmem:[%s1138_s1 + $0x38] sm:$0xff]  ;;  %vm255_vm1 = vcmask 261120  }
   0xb   :  { %v232_v16 = vld [vmem:[%s1141_s4 + $0x8] sm:$0xff]  ;;  %v231_v17 = vld [vmem:[%s1141_s4] sm:$0xff]  ;;  %v388_v18 = vld [vmem:[%s1143_s6 + $0x18] sm:$0xff] }
   0xc   :  { %797 = vmatmul.mubr.msk.f32.gmra.mxu0 %vm45_vm0, %v42_v11  ;;  %252 = vperm.xlu0 %846, %v234_v13   ;;  %v387_v19 = vld [vmem:[%s1143_s6 + $0x10] sm:$0xff]  ;;  %v386_v20 = vld [vmem:[%s1143_s6 + $0x8] sm:$0xff]  ;;  %v385_v21 = vld [vmem:[%s1143_s6] sm:$0xff] }
   0xd   :  { %799 = vmatprep.mubr.msk.f32.mxu0 %vm45_vm0, %v43_v12  ;;  %247 = vperm.xlu1 %847, %v233_v14   ;;  %v534_v22 = vld [vmem:[%s1145_s8] sm:$0xff]  ;;  %v535_v23 = vld [vmem:[%s1145_s8 + $0x8] sm:$0xff]  ;;  %v536_v24 = vld [vmem:[%s1145_s8 + $0x10] sm:$0xff] }
   0xe   :  { %v537_v25 = vld [vmem:[%s1145_s8 + $0x18] sm:$0xff]  ;;  %v683_v26 = vld [vmem:[%s1146_s9] sm:$0xff]  ;;  %v684_v27 = vld [vmem:[%s1146_s9 + $0x8] sm:$0xff] }
   0xf   :  { %v685_v28 = vld [vmem:[%s1146_s9 + $0x10] sm:$0xff]  ;;  %v686_v29 = vld [vmem:[%s1146_s9 + $0x18] sm:$0xff]  ;;  %v227_v30 = vld [vmem:[%s1140_s3] sm:$0xff] }
  0x10   :  { %800 = vmatmul.mubr.msk.f32.gmra.mxu0 %vm45_vm0, %v44_v15  ;;  %242 = vperm.xlu0 %846, %v232_v16   ;;  %v228_v7 = vld [vmem:[%s1140_s3 + $0x8] sm:$0xff]  ;;  %v229_v8 = vld [vmem:[%s1140_s3 + $0x10] sm:$0xff]  ;;  %v230_v9 = vld [vmem:[%s1140_s3 + $0x18] sm:$0xff] }
  0x11   :  { %237 = vperm.xlu1 %847, %v231_v17   ;;  %810 = vmatprep.mubr.msk.f32.mxu1 %vm255_vm1, %v227_v30  ;;  %v381_v10 = vld [vmem:[%s1142_s5] sm:$0xff] }
  0x14   :  { %406 = vperm.xlu0 %846, %v388_v18  }
  0x15   :  { %401 = vperm.xlu1 %847, %v387_v19  }
  0x18   :  { %396 = vperm.xlu0 %846, %v386_v20  }
  0x19   :  { %391 = vperm.xlu1 %847, %v385_v21  }
  0x1c   :  { %540 = vperm.xlu0 %846, %v534_v22  }
  0x1d   :  { %545 = vperm.xlu1 %847, %v535_v23  }
  0x20   :  { %550 = vperm.xlu0 %846, %v536_v24  }
  0x21   :  { %555 = vperm.xlu1 %847, %v537_v25  }
  0x24   :  { %689 = vperm.xlu0 %846, %v683_v26  }
  0x25   :  { %694 = vperm.xlu1 %847, %v684_v27  }
  0x28   :  { %699 = vperm.xlu0 %846, %v685_v28  }
  0x29   :  { %704 = vperm.xlu1 %847, %v686_v29  }
  0x7f   :  { %v197_v36 = vpop.permute.xlu0 %196 }
  0x80   :  { %v187_v33 = vpop.permute.xlu1 %186 }
  0x83   :  { %v192_v46 = vpop.permute.xlu0 %191 }
  0x84   :  { %v182_v39 = vpop.permute.xlu1 %181 }
  0x87   :  { %v253_v11 = vpop.permute.xlu0 %252 }
  0x88   :  { %v248_v12 = vpop.permute.xlu1 %247 }
  0x8b   :  { %v243_v13 = vpop.permute.xlu0 %242 }
  0x8c   :  { %v238_v16 = vpop.permute.xlu1 %237 }
  0xc4   :  { %v1058_v31 = vpop.f32.mrf.mxu0 }
  0xc6   :  { %v1060_v32 = vpop.f32.mrf.mxu0 }
  0xc8   :  { %v1062_v34 = vpop.f32.mrf.mxu0 }
  0xca   :  { %v1064_v35 = vpop.f32.mrf.mxu0 }
  0xcc   :  { %v798_v37 = vpop.f32.mrf.mxu0 }
  0xcd   :  { %v200_v38 = vadd.f32 %v798_v37, %v187_v33 }
  0xce   :  { %v156_v40 = vpop.f32.mrf.mxu0 }
  0xcf   :  { %v208_v41 = vmul.f32 0.5, %v200_v38  ;;  %v199_v42 = vadd.f32 %v182_v39, %v156_v40  ;;  %v204_v1 = vmul.f32 %v200_v38, %v200_v38 }
  0xd0   :  { %v801_v43 = vpop.f32.mrf.mxu0 }
  0xd1   :  { %v207_v44 = vmul.f32 0.5, %v199_v42  ;;  %v202_v45 = vadd.f32 %v801_v43, %v197_v36  ;;  %848 = vtanh.f32 %v208_v41  ;;  %v203_v4 = vmul.f32 %v199_v42, %v199_v42 }
  0xd2   :  { %v166_v47 = vpop.f32.mrf.mxu0 }
  0xd3   :  { %v210_v48 = vmul.f32 0.5, %v202_v45  ;;  %v201_v49 = vadd.f32 %v192_v46, %v166_v47  ;;  %850 = vtanh.f32 %v207_v44  ;;  %v206_v57 = vmul.f32 %v202_v45, %v202_v45 }
  0xd5   :  { %852 = vtanh.f32 %v210_v48  ;;  %v209_v50 = vmul.f32 0.5, %v201_v49  ;;  %v205_v61 = vmul.f32 %v201_v49, %v201_v49 }
  0xd7   :  { %854 = vtanh.f32 %v209_v50 }
  0xde   :  { %v849_v51 = vpop.eup %848 }
  0xdf   :  { %v216_v55 = vadd.f32 1.0, %v849_v51 }
  0xe0   :  { %v851_v52 = vpop.eup %850 }
  0xe1   :  { %v215_v60 = vadd.f32 1.0, %v851_v52  ;;  %v220_v0 = vmul.f32 0.5, %v216_v55  ;;  %v407_v55 = vpop.permute.xlu0 %406 }
  0xe2   :  { %v853_v53 = vpop.eup %852 }
  0xe3   :  { %v218_v54 = vadd.f32 1.0, %v853_v53  ;;  %v219_v3 = vmul.f32 0.5, %v215_v60  ;;  %v224_v5 = vmul.f32 %v220_v0, %v204_v1 }
  0xe4   :  { %v855_v56 = vpop.eup %854 }
  0xe5   :  { %v222_v58 = vmul.f32 0.5, %v218_v54  ;;  %v217_v59 = vadd.f32 1.0, %v855_v56  ;;  %v223_v6 = vmul.f32 %v219_v3, %v203_v4  ;;  %v530_v54 = vld [vmem:[%s1144_s7] sm:$0xff]  ;;  %v402_v56 = vpop.permute.xlu1 %401 }
  0xe6   :  { %838 = vmatprep.mubr.msk.f32.mxu0 %vm255_vm1, %v530_v54 }
  0xe7   :  { %v226_v62 = vmul.f32 %v222_v58, %v206_v57  ;;  %v221_v63 = vmul.f32 0.5, %v217_v59  ;;  %v397_v57 = vpop.permute.xlu0 %396 }
  0xe9   :  { %802 = vmatprep.subr.mxu1 %v226_v62  ;;  %v225_v2 = vmul.f32 %v221_v63, %v205_v61  ;;  %v392_v60 = vpop.permute.xlu1 %391 }
  0xea   :  { %803 = vmatpush3.msra.mxu1 %v226_v62 }
  0xeb   :  { %804 = vmatprep.subr.mxu1 %v225_v2 }
  0xec   :  { %805 = vmatpush3.msra.mxu1 %v225_v2 }
  0xed   :  { %806 = vmatprep.subr.mxu1 %v224_v5 }
  0xee   :  { %807 = vmatpush3.msra.mxu1 %v224_v5 }
  0xef   :  { %808 = vmatprep.subr.mxu1 %v223_v6 }
  0xf0   :  { %809 = vmatpush3.msra.mxu1 %v223_v6 }
  0xf1   :  { %811 = vmatmul.mubr.msk.f32.vlgmr.msra.gmra.mxu1 %vm255_vm1, %v228_v7 }
  0xf2   :  { %813 = vmatprep.mubr.msk.f32.mxu1 %vm255_vm1, %v229_v8 }
  0xf5   :  { %814 = vmatmul.mubr.msk.f32.gmra.mxu1 %vm255_vm1, %v230_v9 }
  0xf6   :  { %824 = vmatprep.mubr.msk.f32.mxu1 %vm255_vm1, %v381_v10 }
 0x1b1   :  { %v812_v14 = vpop.f32.mrf.mxu1 }
 0x1b2   :  { %v340_v15 = vadd.f32 %v812_v14, %v243_v13 }
 0x1b3   :  { %v334_v17 = vpop.f32.mrf.mxu1 }
 0x1b4   :  { %v358_v18 = vmul.f32 0.5, %v340_v15  ;;  %v335_v19 = vadd.f32 %v334_v17, %v238_v16  ;;  %v354_v42 = vmul.f32 %v340_v15, %v340_v15 }
 0x1b5   :  { %v815_v20 = vpop.f32.mrf.mxu1 }
 0x1b6   :  { %856 = vtanh.f32 %v358_v18  ;;  %v357_v21 = vmul.f32 0.5, %v335_v19  ;;  %v350_v22 = vadd.f32 %v815_v20, %v253_v11  ;;  %v353_v48 = vmul.f32 %v335_v19, %v335_v19 }
 0x1b7   :  { %v344_v23 = vpop.f32.mrf.mxu1 }
 0x1b8   :  { %858 = vtanh.f32 %v357_v21  ;;  %v360_v24 = vmul.f32 0.5, %v350_v22  ;;  %v345_v25 = vadd.f32 %v344_v23, %v248_v12  ;;  %v356_v39 = vmul.f32 %v350_v22, %v350_v22 }
 0x1ba   :  { %860 = vtanh.f32 %v360_v24  ;;  %v359_v26 = vmul.f32 0.5, %v345_v25  ;;  %v355_v45 = vmul.f32 %v345_v25, %v345_v25 }
 0x1bc   :  { %862 = vtanh.f32 %v359_v26 }
 0x1c3   :  { %v857_v27 = vpop.eup %856 }
 0x1c4   :  { %v366_v29 = vadd.f32 1.0, %v857_v27  ;;  %v531_v27 = vld [vmem:[%s1144_s7 + $0x8] sm:$0xff] }
 0x1c5   :  { %v859_v28 = vpop.eup %858 }
 0x1c6   :  { %v365_v33 = vadd.f32 1.0, %v859_v28  ;;  %v370_v38 = vmul.f32 0.5, %v366_v29  ;;  %v532_v28 = vld [vmem:[%s1144_s7 + $0x10] sm:$0xff]  ;;  %v533_v29 = vld [vmem:[%s1144_s7 + $0x18] sm:$0xff]  ;;  %s903_s7 = smov [#allocation2]  }
 0x1c7   :  { %v861_v30 = vpop.eup %860  ;;  %s727_s19 = sshll.u32 %s903_s7, 4  ;;  %s728_s19 = int_to_ptr.vmem [resolvable:$true] %s727_s19 }
 0x1c8   :  { %v368_v36 = vadd.f32 1.0, %v861_v30  ;;  %v369_v43 = vmul.f32 0.5, %v365_v33  ;;  %v374_v47 = vmul.f32 %v370_v38, %v354_v42  ;;  %v546_v30 = vpop.permute.xlu1 %545  ;;  %v541_v33 = vpop.permute.xlu0 %540  ;;  %s880_s20 = scalar_lea.vmem %s728_s19, 16  ;;  %s884_s0 = scalar_lea.vmem %s728_s19, 32 }
 0x1c9   :  { %v863_v37 = vpop.eup %862  ;;  %p881_p0 = scmp.ne.s32.totalorder %s728_s19, %s880_s20  ;;  %p885_p1 = scmp.lt.s32.totalorder %s728_s19, %s728_s19 }
 0x1ca   :  { %v372_v40 = vmul.f32 0.5, %v368_v36  ;;  %v367_v41 = vadd.f32 1.0, %v863_v37  ;;  %v373_v51 = vmul.f32 %v369_v43, %v353_v48  ;;  %v1092_v53 = vadd.f32 %v1058_v31, %v374_v47  ;;  %v383_v31 = vld [vmem:[%s1142_s5 + $0x10] sm:$0xff]  ;;  %p886_p2 = scmp.lt.s32.totalorder %s884_s0, %s880_s20 }
 0x1cc   :  { %v376_v44 = vmul.f32 %v372_v40, %v356_v39  ;;  %v371_v46 = vmul.f32 0.5, %v367_v41  ;;  %v556_v41 = vpop.permute.xlu1 %555  ;;  %p887_p3 = por %p886_p2, %p885_p1 }
 0x1ce   :  { %v375_v49 = vmul.f32 %v371_v46, %v355_v45  ;;  %v1083_v50 = vadd.f32 %v1062_v34, %v376_v44  ;;  %v1097_v34 = vadd.f32 %v373_v51, %v1060_v32  ;;  %v384_v32 = vld [vmem:[%s1142_s5 + $0x18] sm:$0xff]  ;;  %v551_v45 = vpop.permute.xlu0 %550  ;;  %p888_p4 = pnand %p887_p3, %p881_p0 }
 0x1d0   :  { %816 = vmatprep.subr.mxu1 %v1083_v50  ;;  %v1087_v52 = vadd.f32 %v375_v49, %v1064_v35  ;;  %v382_v35 = vld [vmem:[%s1142_s5 + $0x8] sm:$0xff] }
 0x1d1   :  { %817 = vmatpush3.msra.mxu1 %v1083_v50 }
 0x1d2   :  { %818 = vmatprep.subr.mxu1 %v1087_v52 }
 0x1d3   :  { %819 = vmatpush3.msra.mxu1 %v1087_v52 }
 0x1d4   :  { %820 = vmatprep.subr.mxu1 %v1092_v53 }
 0x1d5   :  { %821 = vmatpush3.msra.mxu1 %v1092_v53 }
 0x1d6   :  { %822 = vmatprep.subr.mxu1 %v1097_v34 }
 0x1d7   :  { %823 = vmatpush3.msra.mxu1 %v1097_v34 }
 0x1d8   :  { %825 = vmatmul.mubr.msk.f32.vlgmr.msra.gmra.mxu1 %vm255_vm1, %v382_v35 }
 0x1d9   :  { %827 = vmatprep.mubr.msk.f32.mxu1 %vm255_vm1, %v383_v31 }
 0x1dc   :  { %828 = vmatmul.mubr.msk.f32.gmra.mxu1 %vm255_vm1, %v384_v32 }
 0x298   :  { %v826_v58 = vpop.f32.mrf.mxu1 }
 0x299   :  { %v493_v59 = vadd.f32 %v826_v58, %v397_v57 }
 0x29a   :  { %v487_v61 = vpop.f32.mrf.mxu1 }
 0x29b   :  { %v511_v62 = vmul.f32 0.5, %v493_v59  ;;  %v488_v63 = vadd.f32 %v487_v61, %v392_v60  ;;  %v507_v21 = vmul.f32 %v493_v59, %v493_v59 }
 0x29c   :  { %v829_v0 = vpop.f32.mrf.mxu1 }
 0x29d   :  { %v510_v1 = vmul.f32 0.5, %v488_v63  ;;  %v503_v2 = vadd.f32 %v829_v0, %v407_v55  ;;  %864 = vtanh.f32 %v511_v62  ;;  %v506_v24 = vmul.f32 %v488_v63, %v488_v63 }
 0x29e   :  { %v497_v3 = vpop.f32.mrf.mxu1 }
 0x29f   :  { %v513_v4 = vmul.f32 0.5, %v503_v2  ;;  %v498_v5 = vadd.f32 %v497_v3, %v402_v56  ;;  %866 = vtanh.f32 %v510_v1  ;;  %v509_v13 = vmul.f32 %v503_v2, %v503_v2  ;;  %v690_v2 = vpop.permute.xlu0 %689 }
 0x2a1   :  { %868 = vtanh.f32 %v513_v4  ;;  %v512_v6 = vmul.f32 0.5, %v498_v5  ;;  %v508_v17 = vmul.f32 %v498_v5, %v498_v5 }
 0x2a3   :  { %870 = vtanh.f32 %v512_v6 }
 0x2aa   :  { %v865_v7 = vpop.eup %864 }
 0x2ab   :  { %v519_v11 = vadd.f32 1.0, %v865_v7 }
 0x2ac   :  { %v867_v8 = vpop.eup %866 }
 0x2ad   :  { %v518_v16 = vadd.f32 1.0, %v867_v8  ;;  %v523_v20 = vmul.f32 0.5, %v519_v11  ;;  %v695_v8 = vpop.permute.xlu1 %694 }
 0x2ae   :  { %v869_v9 = vpop.eup %868 }
 0x2af   :  { %v521_v10 = vadd.f32 1.0, %v869_v9  ;;  %v522_v23 = vmul.f32 0.5, %v518_v16  ;;  %v527_v25 = vmul.f32 %v523_v20, %v507_v21 }
 0x2b0   :  { %v871_v12 = vpop.eup %870 }
 0x2b1   :  { %v525_v14 = vmul.f32 0.5, %v521_v10  ;;  %v520_v15 = vadd.f32 1.0, %v871_v12  ;;  %v526_v26 = vmul.f32 %v522_v23, %v506_v24 }
 0x2b3   :  { %v529_v18 = vmul.f32 %v525_v14, %v509_v13  ;;  %v524_v19 = vmul.f32 0.5, %v520_v15  ;;  %v700_v14 = vpop.permute.xlu0 %699 }
 0x2b5   :  { %830 = vmatprep.subr.mxu0 %v529_v18  ;;  %v528_v22 = vmul.f32 %v524_v19, %v508_v17  ;;  %v705_v17 = vpop.permute.xlu1 %704 }
 0x2b6   :  { %831 = vmatpush3.msra.mxu0 %v529_v18 }
 0x2b7   :  { %832 = vmatprep.subr.mxu0 %v528_v22 }
 0x2b8   :  { %833 = vmatpush3.msra.mxu0 %v528_v22 }
 0x2b9   :  { %834 = vmatprep.subr.mxu0 %v527_v25 }
 0x2ba   :  { %835 = vmatpush3.msra.mxu0 %v527_v25 }
 0x2bb   :  { %836 = vmatprep.subr.mxu0 %v526_v26 }
 0x2bc   :  { %837 = vmatpush3.msra.mxu0 %v526_v26 }
 0x2bd   :  { %839 = vmatmul.mubr.msk.f32.vlgmr.msra.gmra.mxu0 %vm255_vm1, %v531_v27 }
 0x2be   :  { %841 = vmatprep.mubr.msk.f32.mxu0 %vm255_vm1, %v532_v28 }
 0x2c1   :  { %842 = vmatmul.mubr.msk.f32.gmra.mxu0 %vm255_vm1, %v533_v29 }
 0x37d   :  { %v840_v36 = vpop.f32.mrf.mxu0 }
 0x37e   :  { %v642_v37 = vadd.f32 %v840_v36, %v546_v30 }
 0x37f   :  { %v636_v38 = vpop.f32.mrf.mxu0 }
 0x380   :  { %v660_v39 = vmul.f32 0.5, %v642_v37  ;;  %v637_v40 = vadd.f32 %v636_v38, %v541_v33  ;;  %v656_v32 = vmul.f32 %v642_v37, %v642_v37 }
 0x381   :  { %v843_v42 = vpop.f32.mrf.mxu0 }
 0x382   :  { %872 = vtanh.f32 %v660_v39  ;;  %v659_v43 = vmul.f32 0.5, %v637_v40  ;;  %v652_v44 = vadd.f32 %v843_v42, %v556_v41  ;;  %v655_v58 = vmul.f32 %v637_v40, %v637_v40 }
 0x383   :  { %v646_v46 = vpop.f32.mrf.mxu0 }
 0x384   :  { %874 = vtanh.f32 %v659_v43  ;;  %v662_v47 = vmul.f32 0.5, %v652_v44  ;;  %v647_v48 = vadd.f32 %v646_v46, %v551_v45  ;;  %v658_v63 = vmul.f32 %v652_v44, %v652_v44 }
 0x386   :  { %876 = vtanh.f32 %v662_v47  ;;  %v661_v49 = vmul.f32 0.5, %v647_v48  ;;  %v657_v3 = vmul.f32 %v647_v48, %v647_v48 }
 0x388   :  { %878 = vtanh.f32 %v661_v49 }
 0x38f   :  { %v873_v51 = vpop.eup %872 }
 0x390   :  { %v668_v35 = vadd.f32 1.0, %v873_v51 }
 0x391   :  { %v875_v31 = vpop.eup %874 }
 0x392   :  { %v672_v54 = vmul.f32 0.5, %v668_v35  ;;  %v667_v55 = vadd.f32 1.0, %v875_v31 }
 0x393   :  { %v877_v56 = vpop.eup %876 }
 0x394   :  { %v676_v57 = vmul.f32 %v672_v54, %v656_v32  ;;  %v671_v59 = vmul.f32 0.5, %v667_v55  ;;  %v670_v60 = vadd.f32 1.0, %v877_v56 }
 0x395   :  { %v879_v61 = vpop.eup %878 }
 0x396   :  { %v675_v62 = vmul.f32 %v671_v59, %v655_v58  ;;  %v674_v0 = vmul.f32 0.5, %v670_v60  ;;  %v669_v1 = vadd.f32 1.0, %v879_v61  ;;  %v680_v4 = vadd.f32 %v676_v57, %v1092_v53 }
 0x398   :  { %v679_v5 = vadd.f32 %v675_v62, %v1097_v34  ;;  %v678_v6 = vmul.f32 %v674_v0, %v658_v63  ;;  %v673_v7 = vmul.f32 0.5, %v669_v1  ;;  %v708_v11 = vmul.f32 %v695_v8, %v680_v4 }
 0x39a   :  { %v707_v9 = vmul.f32 %v690_v2, %v679_v5  ;;  %v677_v10 = vmul.f32 %v673_v7, %v657_v3  ;;  %v682_v12 = vadd.f32 %v678_v6, %v1083_v50 }
 0x39c   :  { %v681_v13 = vadd.f32 %v677_v10, %v1087_v52  ;;  %v711_v15 = vadd.f32 %v708_v11, %v707_v9  ;;  %v710_v18 = vmul.f32 %v705_v17, %v682_v12 }
 0x39e   :  { %v709_v16 = vmul.f32 %v700_v14, %v681_v13 }
 0x3a0   :  { %v712_v19 = vadd.f32 %v711_v15, %v709_v16 }
 0x3a2   :  { %v713_v20 = vadd.f32 %v712_v19, %v710_v18 }
 0x3a4   :  { %v714_v53 = vrot.slane %v713_v20, 4 }
 0x3a6   :  { %v715_v21 = vadd.f32 %v714_v53, %v713_v20 }
 0x3a8   :  { %v716_v34 = vrot.slane %v715_v21, 2 }
 0x3aa   :  { %v717_v22 = vadd.f32 %v716_v34, %v715_v21 }
 0x3ac   :  { %v718_v23 = vrot.slane %v717_v22, 1 }
 0x3ae   :  { %v719_v24 = vadd.f32 %v718_v23, %v717_v22 }
 0x3b0   :  { %720 = vst [vmem:[#allocation2] sm:$0x1] %v719_v24 }
 0x3b1   :  { %891 = shalt.err (!%p888_p4)
}
 0x3b2   :  { %730 = dma.vmem_to_hbm [thread:$0]  %s728_s19, 16, %s1147_s10, [#allocation3]  }
 0x3b3   :  { %900 = dma.done.wait [#allocation3], 16  }
 0x3b4   :  { %901 = vsyncadd [#allocation3], 4294967280 }
 0x3b5   :  { %734 = vsyncpa [#allocation3], 1 }

// kernel: tpu_custom_call.1
= control target key start
LH: loop header
LB: loop body
LE: loop exit
PB: predicated region body
PF: predicated region fallthrough
CT: control target
= control target key end

     0   :  { %vm45_vm0 = vcmask 64512   ;;  %v902_v4 = vmov 0   ;;  %s1137_s0 = inlined_call_operand.vmem [shape: f32[8,128], index: 0, kind: input, shape index: {}]   ;;  %s1138_s1 = inlined_call_operand.vmem [shape: f32[64,8], index: 1, kind: input, shape index: {}]   ;;  %s1139_s2 = inlined_call_operand.vmem [shape: f32[32,1], index: 2, kind: input, shape index: {}]   ;;  %s1140_s3 = inlined_call_operand.vmem [shape: f32[32,32], index: 3, kind: input, shape index: {}]   ;;  %s1141_s4 = inlined_call_operand.vmem [shape: f32[32,1], index: 4, kind: input, shape index: {}]   ;;  %s1142_s5 = inlined_call_operand.vmem [shape: f32[32,32], index: 5, kind: input, shape index: {}]   ;;  %s1143_s6 = inlined_call_operand.vmem [shape: f32[32,1], index: 6, kind: input, shape index: {}]   ;;  %s1144_s7 = inlined_call_operand.vmem [shape: f32[32,32], index: 7, kind: input, shape index: {}]   ;;  %s1145_s8 = inlined_call_operand.vmem [shape: f32[32,1], index: 8, kind: input, shape index: {}]   ;;  %s1146_s9 = inlined_call_operand.vmem [shape: f32[32,1], index: 9, kind: input, shape index: {}]   ;;  %s1147_s10 = inlined_call_operand.hbm [shape: f32[1,1,128], index: 10, kind: output, shape index: {}]  }
   0x1   :  { %v36_v0 = vld [vmem:[%s1137_s0] sm:$0xff]  ;;  %v38_v2 = vld [vmem:[%s1138_s1 + $0x8] sm:$0xff]  ;;  %v39_v3 = vld [vmem:[%s1138_s1 + $0x10] sm:$0xff]  ;;  %846 = vset.pattern.permute.xlu0 %v902_v4  ;;  %847 = vset.pattern.permute.xlu1 %v902_v4 }
   0x2   :  { %v37_v1 = vld [vmem:[%s1138_s1] sm:$0xff]  ;;  %788 = vmatprep.subr.mxu0 %v36_v0  ;;  %v178_v5 = vld [vmem:[%s1139_s2 + $0x18] sm:$0xff]  ;;  %v176_v6 = vld [vmem:[%s1139_s2 + $0x8] sm:$0xff] }
   0x3   :  { %790 = vmatprep.mubr.msk.f32.mxu0 %vm45_vm0, %v37_v1  ;;  %789 = vmatpush3.msra.mxu0 %v36_v0  ;;  %v40_v7 = vld [vmem:[%s1138_s1 + $0x18] sm:$0xff]  ;;  %v41_v8 = vld [vmem:[%s1138_s1 + $0x20] sm:$0xff]  ;;  %v177_v9 = vld [vmem:[%s1139_s2 + $0x10] sm:$0xff] }
   0x4   :  { %791 = vmatmul.mubr.msk.f32.vlgmr.msra.gmra.mxu0 %vm45_vm0, %v38_v2  ;;  %196 = vperm.xlu0 %846, %v178_v5   ;;  %v175_v10 = vld [vmem:[%s1139_s2] sm:$0xff]  ;;  %v42_v11 = vld [vmem:[%s1138_s1 + $0x28] sm:$0xff]  ;;  %v43_v12 = vld [vmem:[%s1138_s1 + $0x30] sm:$0xff] }
   0x5   :  { %793 = vmatprep.mubr.msk.f32.mxu0 %vm45_vm0, %v39_v3  ;;  %186 = vperm.xlu1 %847, %v176_v6   ;;  %v234_v13 = vld [vmem:[%s1141_s4 + $0x18] sm:$0xff] }
   0x8   :  { %794 = vmatmul.mubr.msk.f32.gmra.mxu0 %vm45_vm0, %v40_v7  ;;  %191 = vperm.xlu0 %846, %v177_v9  }
   0x9   :  { %796 = vmatprep.mubr.msk.f32.mxu0 %vm45_vm0, %v41_v8  ;;  %181 = vperm.xlu1 %847, %v175_v10  }
   0xa   :  { %15 = vsyncpa [#allocation3], 0  ;;  %v233_v14 = vld [vmem:[%s1141_s4 + $0x10] sm:$0xff]  ;;  %v44_v15 = vld [vmem:[%s1138_s1 + $0x38] sm:$0xff]  ;;  %vm255_vm1 = vcmask 261120  }
   0xb   :  { %v232_v16 = vld [vmem:[%s1141_s4 + $0x8] sm:$0xff]  ;;  %v231_v17 = vld [vmem:[%s1141_s4] sm:$0xff]  ;;  %v388_v18 = vld [vmem:[%s1143_s6 + $0x18] sm:$0xff] }
   0xc   :  { %797 = vmatmul.mubr.msk.f32.gmra.mxu0 %vm45_vm0, %v42_v11  ;;  %252 = vperm.xlu0 %846, %v234_v13   ;;  %v387_v19 = vld [vmem:[%s1143_s6 + $0x10] sm:$0xff]  ;;  %v386_v20 = vld [vmem:[%s1143_s6 + $0x8] sm:$0xff]  ;;  %v385_v21 = vld [vmem:[%s1143_s6] sm:$0xff] }
   0xd   :  { %799 = vmatprep.mubr.msk.f32.mxu0 %vm45_vm0, %v43_v12  ;;  %247 = vperm.xlu1 %847, %v233_v14   ;;  %v534_v22 = vld [vmem:[%s1145_s8] sm:$0xff]  ;;  %v535_v23 = vld [vmem:[%s1145_s8 + $0x8] sm:$0xff]  ;;  %v536_v24 = vld [vmem:[%s1145_s8 + $0x10] sm:$0xff] }
   0xe   :  { %v537_v25 = vld [vmem:[%s1145_s8 + $0x18] sm:$0xff]  ;;  %v683_v26 = vld [vmem:[%s1146_s9] sm:$0xff]  ;;  %v684_v27 = vld [vmem:[%s1146_s9 + $0x8] sm:$0xff] }
   0xf   :  { %v685_v28 = vld [vmem:[%s1146_s9 + $0x10] sm:$0xff]  ;;  %v686_v29 = vld [vmem:[%s1146_s9 + $0x18] sm:$0xff]  ;;  %v227_v30 = vld [vmem:[%s1140_s3] sm:$0xff] }
  0x10   :  { %800 = vmatmul.mubr.msk.f32.gmra.mxu0 %vm45_vm0, %v44_v15  ;;  %242 = vperm.xlu0 %846, %v232_v16   ;;  %v228_v7 = vld [vmem:[%s1140_s3 + $0x8] sm:$0xff]  ;;  %v229_v8 = vld [vmem:[%s1140_s3 + $0x10] sm:$0xff]  ;;  %v230_v9 = vld [vmem:[%s1140_s3 + $0x18] sm:$0xff] }
  0x11   :  { %237 = vperm.xlu1 %847, %v231_v17   ;;  %810 = vmatprep.mubr.msk.f32.mxu1 %vm255_vm1, %v227_v30  ;;  %v381_v10 = vld [vmem:[%s1142_s5] sm:$0xff] }
  0x14   :  { %406 = vperm.xlu0 %846, %v388_v18  }
  0x15   :  { %401 = vperm.xlu1 %847, %v387_v19  }
  0x18   :  { %396 = vperm.xlu0 %846, %v386_v20  }
  0x19   :  { %391 = vperm.xlu1 %847, %v385_v21  }
  0x1c   :  { %540 = vperm.xlu0 %846, %v534_v22  }
  0x1d   :  { %545 = vperm.xlu1 %847, %v535_v23  }
  0x20   :  { %550 = vperm.xlu0 %846, %v536_v24  }
  0x21   :  { %555 = vperm.xlu1 %847, %v537_v25  }
  0x24   :  { %689 = vperm.xlu0 %846, %v683_v26  }
  0x25   :  { %694 = vperm.xlu1 %847, %v684_v27  }
  0x28   :  { %699 = vperm.xlu0 %846, %v685_v28  }
  0x29   :  { %704 = vperm.xlu1 %847, %v686_v29  }
  0x7f   :  { %v197_v36 = vpop.permute.xlu0 %196 }
  0x80   :  { %v187_v33 = vpop.permute.xlu1 %186 }
  0x83   :  { %v192_v46 = vpop.permute.xlu0 %191 }
  0x84   :  { %v182_v39 = vpop.permute.xlu1 %181 }
  0x87   :  { %v253_v11 = vpop.permute.xlu0 %252 }
  0x88   :  { %v248_v12 = vpop.permute.xlu1 %247 }
  0x8b   :  { %v243_v13 = vpop.permute.xlu0 %242 }
  0x8c   :  { %v238_v16 = vpop.permute.xlu1 %237 }
  0xc4   :  { %v1058_v31 = vpop.f32.mrf.mxu0 }
  0xc6   :  { %v1060_v32 = vpop.f32.mrf.mxu0 }
  0xc8   :  { %v1062_v34 = vpop.f32.mrf.mxu0 }
  0xca   :  { %v1064_v35 = vpop.f32.mrf.mxu0 }
  0xcc   :  { %v798_v37 = vpop.f32.mrf.mxu0 }
  0xcd   :  { %v200_v38 = vadd.f32 %v798_v37, %v187_v33 }
  0xce   :  { %v156_v40 = vpop.f32.mrf.mxu0 }
  0xcf   :  { %v208_v41 = vmul.f32 0.5, %v200_v38  ;;  %v199_v42 = vadd.f32 %v182_v39, %v156_v40  ;;  %v204_v1 = vmul.f32 %v200_v38, %v200_v38 }
  0xd0   :  { %v801_v43 = vpop.f32.mrf.mxu0 }
  0xd1   :  { %v207_v44 = vmul.f32 0.5, %v199_v42  ;;  %v202_v45 = vadd.f32 %v801_v43, %v197_v36  ;;  %848 = vtanh.f32 %v208_v41  ;;  %v203_v4 = vmul.f32 %v199_v42, %v199_v42 }
  0xd2   :  { %v166_v47 = vpop.f32.mrf.mxu0 }
  0xd3   :  { %v210_v48 = vmul.f32 0.5, %v202_v45  ;;  %v201_v49 = vadd.f32 %v192_v46, %v166_v47  ;;  %850 = vtanh.f32 %v207_v44  ;;  %v206_v57 = vmul.f32 %v202_v45, %v202_v45 }
  0xd5   :  { %852 = vtanh.f32 %v210_v48  ;;  %v209_v50 = vmul.f32 0.5, %v201_v49  ;;  %v205_v61 = vmul.f32 %v201_v49, %v201_v49 }
  0xd7   :  { %854 = vtanh.f32 %v209_v50 }
  0xde   :  { %v849_v51 = vpop.eup %848 }
  0xdf   :  { %v216_v55 = vadd.f32 1.0, %v849_v51 }
  0xe0   :  { %v851_v52 = vpop.eup %850 }
  0xe1   :  { %v215_v60 = vadd.f32 1.0, %v851_v52  ;;  %v220_v0 = vmul.f32 0.5, %v216_v55  ;;  %v407_v55 = vpop.permute.xlu0 %406 }
  0xe2   :  { %v853_v53 = vpop.eup %852 }
  0xe3   :  { %v218_v54 = vadd.f32 1.0, %v853_v53  ;;  %v219_v3 = vmul.f32 0.5, %v215_v60  ;;  %v224_v5 = vmul.f32 %v220_v0, %v204_v1 }
  0xe4   :  { %v855_v56 = vpop.eup %854 }
  0xe5   :  { %v222_v58 = vmul.f32 0.5, %v218_v54  ;;  %v217_v59 = vadd.f32 1.0, %v855_v56  ;;  %v223_v6 = vmul.f32 %v219_v3, %v203_v4  ;;  %v530_v54 = vld [vmem:[%s1144_s7] sm:$0xff]  ;;  %v402_v56 = vpop.permute.xlu1 %401 }
  0xe6   :  { %838 = vmatprep.mubr.msk.f32.mxu0 %vm255_vm1, %v530_v54 }
  0xe7   :  { %v226_v62 = vmul.f32 %v222_v58, %v206_v57  ;;  %v221_v63 = vmul.f32 0.5, %v217_v59  ;;  %v397_v57 = vpop.permute.xlu0 %396 }
  0xe9   :  { %802 = vmatprep.subr.mxu1 %v226_v62  ;;  %v225_v2 = vmul.f32 %v221_v63, %v205_v61  ;;  %v392_v60 = vpop.permute.xlu1 %391 }
  0xea   :  { %803 = vmatpush3.msra.mxu1 %v226_v62 }
  0xeb   :  { %804 = vmatprep.subr.mxu1 %v225_v2 }
  0xec   :  { %805 = vmatpush3.msra.mxu1 %v225_v2 }
  0xed   :  { %806 = vmatprep.subr.mxu1 %v224_v5 }
  0xee   :  { %807 = vmatpush3.msra.mxu1 %v224_v5 }
  0xef   :  { %808 = vmatprep.subr.mxu1 %v223_v6 }
  0xf0   :  { %809 = vmatpush3.msra.mxu1 %v223_v6 }
  0xf1   :  { %811 = vmatmul.mubr.msk.f32.vlgmr.msra.gmra.mxu1 %vm255_vm1, %v228_v7 }
  0xf2   :  { %813 = vmatprep.mubr.msk.f32.mxu1 %vm255_vm1, %v229_v8 }
  0xf5   :  { %814 = vmatmul.mubr.msk.f32.gmra.mxu1 %vm255_vm1, %v230_v9 }
  0xf6   :  { %824 = vmatprep.mubr.msk.f32.mxu1 %vm255_vm1, %v381_v10 }
 0x1b1   :  { %v812_v14 = vpop.f32.mrf.mxu1 }
 0x1b2   :  { %v340_v15 = vadd.f32 %v812_v14, %v243_v13 }
 0x1b3   :  { %v334_v17 = vpop.f32.mrf.mxu1 }
 0x1b4   :  { %v358_v18 = vmul.f32 0.5, %v340_v15  ;;  %v335_v19 = vadd.f32 %v334_v17, %v238_v16  ;;  %v354_v42 = vmul.f32 %v340_v15, %v340_v15 }
 0x1b5   :  { %v815_v20 = vpop.f32.mrf.mxu1 }
 0x1b6   :  { %856 = vtanh.f32 %v358_v18  ;;  %v357_v21 = vmul.f32 0.5, %v335_v19  ;;  %v350_v22 = vadd.f32 %v815_v20, %v253_v11  ;;  %v353_v48 = vmul.f32 %v335_v19, %v335_v19 }
 0x1b7   :  { %v344_v23 = vpop.f32.mrf.mxu1 }
 0x1b8   :  { %858 = vtanh.f32 %v357_v21  ;;  %v360_v24 = vmul.f32 0.5, %v350_v22  ;;  %v345_v25 = vadd.f32 %v344_v23, %v248_v12  ;;  %v356_v39 = vmul.f32 %v350_v22, %v350_v22 }
 0x1ba   :  { %860 = vtanh.f32 %v360_v24  ;;  %v359_v26 = vmul.f32 0.5, %v345_v25  ;;  %v355_v45 = vmul.f32 %v345_v25, %v345_v25 }
 0x1bc   :  { %862 = vtanh.f32 %v359_v26 }
 0x1c3   :  { %v857_v27 = vpop.eup %856 }
 0x1c4   :  { %v366_v29 = vadd.f32 1.0, %v857_v27  ;;  %v531_v27 = vld [vmem:[%s1144_s7 + $0x8] sm:$0xff] }
 0x1c5   :  { %v859_v28 = vpop.eup %858 }
 0x1c6   :  { %v365_v33 = vadd.f32 1.0, %v859_v28  ;;  %v370_v38 = vmul.f32 0.5, %v366_v29  ;;  %v532_v28 = vld [vmem:[%s1144_s7 + $0x10] sm:$0xff]  ;;  %v533_v29 = vld [vmem:[%s1144_s7 + $0x18] sm:$0xff]  ;;  %s903_s7 = smov [#allocation2]  }
 0x1c7   :  { %v861_v30 = vpop.eup %860  ;;  %s727_s19 = sshll.u32 %s903_s7, 4  ;;  %s728_s19 = int_to_ptr.vmem [resolvable:$true] %s727_s19 }
 0x1c8   :  { %v368_v36 = vadd.f32 1.0, %v861_v30  ;;  %v369_v43 = vmul.f32 0.5, %v365_v33  ;;  %v374_v47 = vmul.f32 %v370_v38, %v354_v42  ;;  %v546_v30 = vpop.permute.xlu1 %545  ;;  %v541_v33 = vpop.permute.xlu0 %540  ;;  %s880_s20 = scalar_lea.vmem %s728_s19, 16  ;;  %s884_s0 = scalar_lea.vmem %s728_s19, 32 }
 0x1c9   :  { %v863_v37 = vpop.eup %862  ;;  %p881_p0 = scmp.ne.s32.totalorder %s728_s19, %s880_s20  ;;  %p885_p1 = scmp.lt.s32.totalorder %s728_s19, %s728_s19 }
 0x1ca   :  { %v372_v40 = vmul.f32 0.5, %v368_v36  ;;  %v367_v41 = vadd.f32 1.0, %v863_v37  ;;  %v373_v51 = vmul.f32 %v369_v43, %v353_v48  ;;  %v1092_v53 = vadd.f32 %v1058_v31, %v374_v47  ;;  %v383_v31 = vld [vmem:[%s1142_s5 + $0x10] sm:$0xff]  ;;  %p886_p2 = scmp.lt.s32.totalorder %s884_s0, %s880_s20 }
 0x1cc   :  { %v376_v44 = vmul.f32 %v372_v40, %v356_v39  ;;  %v371_v46 = vmul.f32 0.5, %v367_v41  ;;  %v556_v41 = vpop.permute.xlu1 %555  ;;  %p887_p3 = por %p886_p2, %p885_p1 }
 0x1ce   :  { %v375_v49 = vmul.f32 %v371_v46, %v355_v45  ;;  %v1083_v50 = vadd.f32 %v1062_v34, %v376_v44  ;;  %v1097_v34 = vadd.f32 %v373_v51, %v1060_v32  ;;  %v384_v32 = vld [vmem:[%s1142_s5 + $0x18] sm:$0xff]  ;;  %v551_v45 = vpop.permute.xlu0 %550  ;;  %p888_p4 = pnand %p887_p3, %p881_p0 }
 0x1d0   :  { %816 = vmatprep.subr.mxu1 %v1083_v50  ;;  %v1087_v52 = vadd.f32 %v375_v49, %v1064_v35  ;;  %v382_v35 = vld [vmem:[%s1142_s5 + $0x8] sm:$0xff] }
 0x1d1   :  { %817 = vmatpush3.msra.mxu1 %v1083_v50 }
 0x1d2   :  { %818 = vmatprep.subr.mxu1 %v1087_v52 }
 0x1d3   :  { %819 = vmatpush3.msra.mxu1 %v1087_v52 }
 0x1d4   :  { %820 = vmatprep.subr.mxu1 %v1092_v53 }
 0x1d5   :  { %821 = vmatpush3.msra.mxu1 %v1092_v53 }
 0x1d6   :  { %822 = vmatprep.subr.mxu1 %v1097_v34 }
 0x1d7   :  { %823 = vmatpush3.msra.mxu1 %v1097_v34 }
 0x1d8   :  { %825 = vmatmul.mubr.msk.f32.vlgmr.msra.gmra.mxu1 %vm255_vm1, %v382_v35 }
 0x1d9   :  { %827 = vmatprep.mubr.msk.f32.mxu1 %vm255_vm1, %v383_v31 }
 0x1dc   :  { %828 = vmatmul.mubr.msk.f32.gmra.mxu1 %vm255_vm1, %v384_v32 }
 0x298   :  { %v826_v58 = vpop.f32.mrf.mxu1 }
 0x299   :  { %v493_v59 = vadd.f32 %v826_v58, %v397_v57 }
 0x29a   :  { %v487_v61 = vpop.f32.mrf.mxu1 }
 0x29b   :  { %v511_v62 = vmul.f32 0.5, %v493_v59  ;;  %v488_v63 = vadd.f32 %v487_v61, %v392_v60  ;;  %v507_v21 = vmul.f32 %v493_v59, %v493_v59 }
 0x29c   :  { %v829_v0 = vpop.f32.mrf.mxu1 }
 0x29d   :  { %v510_v1 = vmul.f32 0.5, %v488_v63  ;;  %v503_v2 = vadd.f32 %v829_v0, %v407_v55  ;;  %864 = vtanh.f32 %v511_v62  ;;  %v506_v24 = vmul.f32 %v488_v63, %v488_v63 }
 0x29e   :  { %v497_v3 = vpop.f32.mrf.mxu1 }
 0x29f   :  { %v513_v4 = vmul.f32 0.5, %v503_v2  ;;  %v498_v5 = vadd.f32 %v497_v3, %v402_v56  ;;  %866 = vtanh.f32 %v510_v1  ;;  %v509_v13 = vmul.f32 %v503_v2, %v503_v2  ;;  %v690_v2 = vpop.permute.xlu0 %689 }
 0x2a1   :  { %868 = vtanh.f32 %v513_v4  ;;  %v512_v6 = vmul.f32 0.5, %v498_v5  ;;  %v508_v17 = vmul.f32 %v498_v5, %v498_v5 }
 0x2a3   :  { %870 = vtanh.f32 %v512_v6 }
 0x2aa   :  { %v865_v7 = vpop.eup %864 }
 0x2ab   :  { %v519_v11 = vadd.f32 1.0, %v865_v7 }
 0x2ac   :  { %v867_v8 = vpop.eup %866 }
 0x2ad   :  { %v518_v16 = vadd.f32 1.0, %v867_v8  ;;  %v523_v20 = vmul.f32 0.5, %v519_v11  ;;  %v695_v8 = vpop.permute.xlu1 %694 }
 0x2ae   :  { %v869_v9 = vpop.eup %868 }
 0x2af   :  { %v521_v10 = vadd.f32 1.0, %v869_v9  ;;  %v522_v23 = vmul.f32 0.5, %v518_v16  ;;  %v527_v25 = vmul.f32 %v523_v20, %v507_v21 }
 0x2b0   :  { %v871_v12 = vpop.eup %870 }
 0x2b1   :  { %v525_v14 = vmul.f32 0.5, %v521_v10  ;;  %v520_v15 = vadd.f32 1.0, %v871_v12  ;;  %v526_v26 = vmul.f32 %v522_v23, %v506_v24 }
 0x2b3   :  { %v529_v18 = vmul.f32 %v525_v14, %v509_v13  ;;  %v524_v19 = vmul.f32 0.5, %v520_v15  ;;  %v700_v14 = vpop.permute.xlu0 %699 }
 0x2b5   :  { %830 = vmatprep.subr.mxu0 %v529_v18  ;;  %v528_v22 = vmul.f32 %v524_v19, %v508_v17  ;;  %v705_v17 = vpop.permute.xlu1 %704 }
 0x2b6   :  { %831 = vmatpush3.msra.mxu0 %v529_v18 }
 0x2b7   :  { %832 = vmatprep.subr.mxu0 %v528_v22 }
 0x2b8   :  { %833 = vmatpush3.msra.mxu0 %v528_v22 }
 0x2b9   :  { %834 = vmatprep.subr.mxu0 %v527_v25 }
 0x2ba   :  { %835 = vmatpush3.msra.mxu0 %v527_v25 }
 0x2bb   :  { %836 = vmatprep.subr.mxu0 %v526_v26 }
 0x2bc   :  { %837 = vmatpush3.msra.mxu0 %v526_v26 }
 0x2bd   :  { %839 = vmatmul.mubr.msk.f32.vlgmr.msra.gmra.mxu0 %vm255_vm1, %v531_v27 }
 0x2be   :  { %841 = vmatprep.mubr.msk.f32.mxu0 %vm255_vm1, %v532_v28 }
 0x2c1   :  { %842 = vmatmul.mubr.msk.f32.gmra.mxu0 %vm255_vm1, %v533_v29 }
 0x37d   :  { %v840_v36 = vpop.f32.mrf.mxu0 }
 0x37e   :  { %v642_v37 = vadd.f32 %v840_v36, %v546_v30 }
 0x37f   :  { %v636_v38 = vpop.f32.mrf.mxu0 }
 0x380   :  { %v660_v39 = vmul.f32 0.5, %v642_v37  ;;  %v637_v40 = vadd.f32 %v636_v38, %v541_v33  ;;  %v656_v32 = vmul.f32 %v642_v37, %v642_v37 }
 0x381   :  { %v843_v42 = vpop.f32.mrf.mxu0 }
 0x382   :  { %872 = vtanh.f32 %v660_v39  ;;  %v659_v43 = vmul.f32 0.5, %v637_v40  ;;  %v652_v44 = vadd.f32 %v843_v42, %v556_v41  ;;  %v655_v58 = vmul.f32 %v637_v40, %v637_v40 }
 0x383   :  { %v646_v46 = vpop.f32.mrf.mxu0 }
 0x384   :  { %874 = vtanh.f32 %v659_v43  ;;  %v662_v47 = vmul.f32 0.5, %v652_v44  ;;  %v647_v48 = vadd.f32 %v646_v46, %v551_v45  ;;  %v658_v63 = vmul.f32 %v652_v44, %v652_v44 }
 0x386   :  { %876 = vtanh.f32 %v662_v47  ;;  %v661_v49 = vmul.f32 0.5, %v647_v48  ;;  %v657_v3 = vmul.f32 %v647_v48, %v647_v48 }
 0x388   :  { %878 = vtanh.f32 %v661_v49 }
 0x38f   :  { %v873_v51 = vpop.eup %872 }
 0x390   :  { %v668_v35 = vadd.f32 1.0, %v873_v51 }
 0x391   :  { %v875_v31 = vpop.eup %874 }
 0x392   :  { %v672_v54 = vmul.f32 0.5, %v668_v35  ;;  %v667_v55 = vadd.f32 1.0, %v875_v31 }
 0x393   :  { %v877_v56 = vpop.eup %876 }
 0x394   :  { %v676_v57 = vmul.f32 %v672_v54, %v656_v32  ;;  %v671_v59 = vmul.f32 0.5, %v667_v55  ;;  %v670_v60 = vadd.f32 1.0, %v877_v56 }
 0x395   :  { %v879_v61 = vpop.eup %878 }
 0x396   :  { %v675_v62 = vmul.f32 %v671_v59, %v655_v58  ;;  %v674_v0 = vmul.f32 0.5, %v670_v60  ;;  %v669_v1 = vadd.f32 1.0, %v879_v61  ;;  %v680_v4 = vadd.f32 %v676_v57, %v1092_v53 }
 0x398   :  { %v679_v5 = vadd.f32 %v675_v62, %v1097_v34  ;;  %v678_v6 = vmul.f32 %v674_v0, %v658_v63  ;;  %v673_v7 = vmul.f32 0.5, %v669_v1  ;;  %v708_v11 = vmul.f32 %v695_v8, %v680_v4 }
 0x39a   :  { %v707_v9 = vmul.f32 %v690_v2, %v679_v5  ;;  %v677_v10 = vmul.f32 %v673_v7, %v657_v3  ;;  %v682_v12 = vadd.f32 %v678_v6, %v1083_v50 }
 0x39c   :  { %v681_v13 = vadd.f32 %v677_v10, %v1087_v52  ;;  %v711_v15 = vadd.f32 %v708_v11, %v707_v9  ;;  %v710_v18 = vmul.f32 %v705_v17, %v682_v12 }
 0x39e   :  { %v709_v16 = vmul.f32 %v700_v14, %v681_v13 }
 0x3a0   :  { %v712_v19 = vadd.f32 %v711_v15, %v709_v16 }
 0x3a2   :  { %v713_v20 = vadd.f32 %v712_v19, %v710_v18 }
 0x3a4   :  { %v714_v53 = vrot.slane %v713_v20, 4 }
 0x3a6   :  { %v715_v21 = vadd.f32 %v714_v53, %v713_v20 }
 0x3a8   :  { %v716_v34 = vrot.slane %v715_v21, 2 }
 0x3aa   :  { %v717_v22 = vadd.f32 %v716_v34, %v715_v21 }
 0x3ac   :  { %v718_v23 = vrot.slane %v717_v22, 1 }
 0x3ae   :  { %v719_v24 = vadd.f32 %v718_v23, %v717_v22 }
 0x3b0   :  { %720 = vst [vmem:[#allocation2] sm:$0x1] %v719_v24 }
 0x3b1   :  { %891 = shalt.err (!%p888_p4)
}
 0x3b2   :  { %730 = dma.vmem_to_hbm [thread:$0]  %s728_s19, 16, %s1147_s10, [#allocation3]  }
 0x3b3   :  { %900 = dma.done.wait [#allocation3], 16  }
 0x3b4   :  { %901 = vsyncadd [#allocation3], 4294967280 }
 0x3b5   :  { %734 = vsyncpa [#allocation3], 1 }

</bundles_post_ra>
